<compile_context>
chip_gen: v5e
topology: v5e:2x2
jax: 0.10.0
libtpu: 0.0.40
codegen_flags: <defaults>
</compile_context>

<pallas_src>
import numpy as np
import jax
import jax.numpy as jnp
from jax import lax
from jax.experimental import pallas as pl
from jax.experimental.pallas import tpu as pltpu

# ---------------- model geometry ----------------
B = 2
L_IN = 32                      # forced by l2: 16*(L-12) + 64 == 384  ->  L == 32
K = 5
C1, C2, C3 = 8, 16, 16
L1, L2, L3 = L_IN - 4, L_IN - 8, L_IN - 12   # 28, 24, 20
H = 64
NCLS = 3
FLAT = C3 * L3                 # 320
EPS = 1e-5
STRIDE = 32                    # row offset of sample 1 in every stacked activation
R1, R2, R3 = 64, 56, 52        # row counts of the h1 / h2 / h3 tiles
R3P = 56                       # 8-aligned row stride of Wbig channel blocks

# static invariants the full-stride filler scheme relies on (review item)
assert STRIDE >= L1                               # sample-1 rows never alias sample-0
assert R2 + K - 1 <= R1 and R3 + K - 1 <= R2      # tap slices stay in bounds
assert STRIDE + L2 <= R2 and STRIDE + L3 <= R3
assert FLAT + H == 384
assert R3P % 8 == 0 and R3P >= STRIDE + L3

# ---------------- packed-slab row offsets (all 8-aligned blocks) ----------------
PATCH_R = 0                    # (R1, K)      conv1 im2col patches
SEL_R   = 64                   # (B, R3)      0/1 per-sample row selector
X2_R    = 72                   # (B, 2)
W1_R    = 80                   # (K, C1)      read as (C1, C1), rows K..7 zero
W2_R    = 88                   # (K*C1, C2)
W3_R    = 128                  # (K*C2, C3)
VEC_R   = 208                  # g1,be1,g2,be2,g3,be3,bl12,bl2,bl3  (one row each)
WL12_R  = 224                  # (2, H)
WREST_R = 232                  # (H, H)       l2 weight rows for the x2 branch
WL3_R   = 296                  # (H, NCLS)
WBIG_R  = 360                  # (C3*R3P, H)  l2 conv weight expanded onto rows
SLAB_ROWS = WBIG_R + C3 * R3P  # 1256
SLAB_COLS = 64


def network_kernel(slab_ref, out_ref):
    f32 = jnp.float32

    def bn_relu(z, l_valid, g, be):
        # Training-mode BatchNorm1d (biased stats over batch*length) folded into a
        # single per-channel affine, then ReLU.  Filler rows are masked from stats.
        rid = lax.broadcasted_iota(jnp.int32, z.shape, 0)
        valid = (rid < l_valid) | ((rid >= STRIDE) & (rid < STRIDE + l_valid))
        zm = jnp.where(valid, z, 0.0)
        inv_n = 1.0 / float(B * l_valid)
        mean = jnp.sum(zm, axis=0, keepdims=True) * inv_n
        ex2 = jnp.sum(zm * zm, axis=0, keepdims=True) * inv_n
        inv = lax.rsqrt(ex2 - mean * mean + EPS)        # biased variance
        a = inv * g
        c = be - mean * a
        return jnp.maximum(z * a + c, 0.0)

    def conv_taps(h, w_row0, cin, cout, rows_out):
        # z[r, o] = sum_k sum_c h[r+k, c] * w[k*cin + c, o]
        # (conv bias dropped: it cancels exactly under the following BN)
        # TODO(synk): tap slices are unaligned sublane slices; a pltpu.roll /
        # fused-im2col variant would move this work off the VALU.
        prods = []
        for k in range(K):
            wk = slab_ref[w_row0 + k * cin: w_row0 + (k + 1) * cin, 0:cout]
            prods.append(jnp.dot(h[k:k + rows_out, :], wk,
                                 preferred_element_type=f32))
        return (prods[0] + prods[1]) + (prods[2] + prods[3]) + prods[4]  # tree sum

    # ---- conv1 + bn1 + relu : one matmul on prebuilt im2col patches ----
    patches = slab_ref[PATCH_R:PATCH_R + R1, 0:C1]                 # (64, 8)
    w1 = slab_ref[W1_R:W1_R + C1, 0:C1]                            # (8, 8)
    z1 = jnp.dot(patches, w1, preferred_element_type=f32)          # (64, 8)
    h1 = bn_relu(z1, L1, slab_ref[VEC_R + 0:VEC_R + 1, 0:C1],
                 slab_ref[VEC_R + 1:VEC_R + 2, 0:C1])              # (64, 8)

    # ---- conv2 / conv3 : K batched taps each, tree-summed ----
    h2 = bn_relu(conv_taps(h1, W2_R, C1, C2, R2), L2,
                 slab_ref[VEC_R + 2:VEC_R + 3, 0:C2],
                 slab_ref[VEC_R + 3:VEC_R + 4, 0:C2])              # (56, 16)
    h3 = bn_relu(conv_taps(h2, W3_R, C2, C3, R3), L3,
                 slab_ref[VEC_R + 4:VEC_R + 5, 0:C3],
                 slab_ref[VEC_R + 5:VEC_R + 6, 0:C3])              # (52, 16)

    # ---- l2 conv-feature contribution, flatten folded into the weight ----
    # T[r, h] = sum_c h3[r, c] * Wbig[c, r, h]   (Wbig zero on filler rows)
    # conv_part = sel @ T                          (per-sample row sums)
    parts = [h3[:, c:c + 1] *
             slab_ref[WBIG_R + c * R3P: WBIG_R + c * R3P + R3, 0:H]
             for c in range(C3)]
    while len(parts) > 1:                                          # balanced tree
        parts = [parts[i] + parts[i + 1] for i in range(0, len(parts), 2)]
    t_rows = parts[0]                                              # (52, 64)
    sel = slab_ref[SEL_R:SEL_R + B, 0:R3]                          # (2, 52)
    conv_part = jnp.dot(sel, t_rows, preferred_element_type=f32)   # (2, 64)

    # ---- x2 branch : Linear(2, 64) + relu as two lane-broadcast FMAs ----
    x2 = slab_ref[X2_R:X2_R + B, 0:2]                              # (2, 2)
    w12a = slab_ref[WL12_R + 0:WL12_R + 1, 0:H]
    w12b = slab_ref[WL12_R + 1:WL12_R + 2, 0:H]
    h2b = jnp.maximum(x2[:, 0:1] * w12a + x2[:, 1:2] * w12b
                      + slab_ref[VEC_R + 6:VEC_R + 7, 0:H], 0.0)   # (2, 64)

    # ---- l2 (384 -> 64): conv part + x2 part + bias, relu ----
    x2_part = jnp.dot(h2b, slab_ref[WREST_R:WREST_R + H, 0:H],
                      preferred_element_type=f32)                  # (2, 64)
    hid = jnp.maximum(conv_part + x2_part
                      + slab_ref[VEC_R + 7:VEC_R + 8, 0:H], 0.0)   # (2, 64)

    # ---- l3 + softmax(dim=1) ----
    logits = (jnp.dot(hid, slab_ref[WL3_R:WL3_R + H, 0:NCLS],
                      preferred_element_type=f32)
              + slab_ref[VEC_R + 8:VEC_R + 9, 0:NCLS])             # (2, 3)
    m = jnp.max(logits, axis=1, keepdims=True)
    e = jnp.exp(logits - m)
    soft = e / jnp.sum(e, axis=1, keepdims=True)

    # lane-dense padded output tile; wrapper slices [:B, :NCLS]
    out_ref[...] = jnp.zeros_like(out_ref)
    out_ref[0:B, 0:NCLS] = soft


def init_params(key):
    ks = jax.random.split(key, 18)
    rnd = lambda k, shape, s=0.2: s * jax.random.normal(k, shape, dtype=jnp.float32)
    return dict(
        w1=rnd(ks[0], (C1, 1, K)),      b1=rnd(ks[1], (C1,)),
        g1=1.0 + rnd(ks[2], (C1,)),     be1=rnd(ks[3], (C1,)),
        w2=rnd(ks[4], (C2, C1, K)),     b2=rnd(ks[5], (C2,)),
        g2=1.0 + rnd(ks[6], (C2,)),     be2=rnd(ks[7], (C2,)),
        w3=rnd(ks[8], (C3, C2, K)),     b3=rnd(ks[9], (C3,)),
        g3=1.0 + rnd(ks[10], (C3,)),    be3=rnd(ks[11], (C3,)),
        wl12=rnd(ks[12], (H, 2)),       bl12=rnd(ks[13], (H,)),
        wl2=rnd(ks[14], (H, FLAT + H)), bl2=rnd(ks[15], (H,)),
        wl3=rnd(ks[16], (NCLS, H)),     bl3=rnd(ks[17], (NCLS,)),
    )


def build_slab(x1, x2, p):
    """Pack inputs + all parameters into one (SLAB_ROWS, 64) f32 array (1 DMA)."""
    f32 = jnp.float32
    slab = jnp.zeros((SLAB_ROWS, SLAB_COLS), f32)

    # conv1 im2col patches, stacked layout: sample 0 rows [0,L1), sample 1 at +32
    x1s = x1[:, 0, :]                                                   # (2, 32)
    pat = jnp.stack([x1s[:, k:k + L1] for k in range(K)], axis=-1)      # (2, 28, 5)
    slab = slab.at[PATCH_R + 0:PATCH_R + L1, 0:K].set(pat[0])
    slab = slab.at[PATCH_R + STRIDE:PATCH_R + STRIDE + L1, 0:K].set(pat[1])

    # per-sample row selector (filler rows are harmless: Wbig is zero there)
    sel = ((jnp.arange(R3)[None, :] // STRIDE)
           == jnp.arange(B)[:, None]).astype(f32)                       # (2, 52)
    slab = slab.at[SEL_R:SEL_R + B, 0:R3].set(sel)
    slab = slab.at[X2_R:X2_R + B, 0:2].set(x2.astype(f32))

    # conv weights, tap-major: row index = k*Cin + ci
    w1f = p['w1'].transpose(2, 1, 0).reshape(K, C1)
    w2f = p['w2'].transpose(2, 1, 0).reshape(K * C1, C2)
    w3f = p['w3'].transpose(2, 1, 0).reshape(K * C2, C3)
    slab = slab.at[W1_R:W1_R + K, 0:C1].set(w1f)
    slab = slab.at[W2_R:W2_R + K * C1, 0:C2].set(w2f)
    slab = slab.at[W3_R:W3_R + K * C2, 0:C3].set(w3f)

    # per-channel / bias vectors (conv biases b1/b2/b3 dropped: BN cancels them)
    vec_list = [p['g1'], p['be1'], p['g2'], p['be2'], p['g3'], p['be3'],
                p['bl12'], p['bl2'], p['bl3']]
    for i, v in enumerate(vec_list):
        slab = slab.at[VEC_R + i, 0:v.shape[0]].set(v)

    # linear weights
    wl2t = p['wl2'].T                                                   # (384, 64)
    slab = slab.at[WL12_R:WL12_R + 2, 0:H].set(p['wl12'].T)
    slab = slab.at[WREST_R:WREST_R + H, 0:H].set(wl2t[FLAT:])
    slab = slab.at[WL3_R:WL3_R + H, 0:NCLS].set(p['wl3'].T)

    # Wbig: l2 conv-feature weight (PyTorch channel-major flatten index c*L3+l)
    # expanded onto the stacked-row layout, zero on filler rows.
    w3d = wl2t[:FLAT].reshape(C3, L3, H)                                # (16,20,64)
    zpad_mid = jnp.zeros((C3, STRIDE - L3, H), f32)                     # rows 20..31
    zpad_end = jnp.zeros((C3, R3P - (STRIDE + L3), H), f32)             # rows 52..55
    wbig = jnp.concatenate([w3d, zpad_mid, w3d, zpad_end],
                           axis=1).reshape(C3 * R3P, H)
    slab = slab.at[WBIG_R:WBIG_R + C3 * R3P, 0:H].set(wbig)
    return slab


def network_forward(x1, x2, p):
    """x1: (B, 1, L_IN) NCW, x2: (B, 2). Layout-only packing + one pallas_call."""
    slab = build_slab(x1, x2, p)
    out = pl.pallas_call(
        network_kernel,
        out_shape=jax.ShapeDtypeStruct((8, 128), jnp.float32),
        in_specs=[pl.BlockSpec(memory_space=pltpu.MemorySpace.VMEM)],
        out_specs=pl.BlockSpec(memory_space=pltpu.MemorySpace.VMEM),
    )(slab)
    return out[:B, :NCLS]
    # TODO(synk): if many (x1, x2) states are evaluated per rollout, grid over a
    # batch of packed slabs with BlockSpec pipelining to amortize per-call cost.


def reference_forward(x1, x2, p):
    """Pure-JAX mirror of the PyTorch module (training-mode BN, softmax dim=1)."""
    def conv1d(x, w, b):  # x: (B, Cin, L), w: (Cout, Cin, K)
        l_out = x.shape[2] - w.shape[2] + 1
        y = jnp.zeros((x.shape[0], w.shape[0], l_out), jnp.float32)
        for k in range(w.shape[2]):
            y = y + jnp.einsum('bcl,oc->bol', x[:, :, k:k + l_out], w[:, :, k])
        return y + b[None, :, None]

    def bn(y, g, be):
        mean = y.mean(axis=(0, 2), keepdims=True)
        var = ((y - mean) ** 2).mean(axis=(0, 2), keepdims=True)
        return (y - mean) / jnp.sqrt(var + EPS) * g[None, :, None] + be[None, :, None]

    h = jax.nn.relu(bn(conv1d(x1, p['w1'], p['b1']), p['g1'], p['be1']))
    h = jax.nn.relu(bn(conv1d(h, p['w2'], p['b2']), p['g2'], p['be2']))
    h = jax.nn.relu(bn(conv1d(h, p['w3'], p['b3']), p['g3'], p['be3']))
    hf = h.reshape(h.shape[0], -1)                            # channel-major flatten
    h2 = jax.nn.relu(x2 @ p['wl12'].T + p['bl12'])
    hc = jnp.concatenate([hf, h2], axis=1)
    h3 = jax.nn.relu(hc @ p['wl2'].T + p['bl2'])
    logits = h3 @ p['wl3'].T + p['bl3']
    return jax.nn.softmax(logits, axis=1)


if __name__ == "__main__":
    key = jax.random.PRNGKey(0)
    kx1, kx2, kp = jax.random.split(key, 3)
    x1 = jax.random.normal(kx1, (B, 1, L_IN), dtype=jnp.float32)
    x2 = jax.random.normal(kx2, (B, 2), dtype=jnp.float32)
    params = init_params(kp)

    out = jax.block_until_ready(network_forward(x1, x2, params))
    ref = jax.block_until_ready(reference_forward(x1, x2, params))

    assert out.shape == (B, NCLS)
    assert bool(jnp.all(jnp.isfinite(out)))
    assert np.allclose(np.asarray(out), np.asarray(ref), atol=1e-4, rtol=1e-3), (out, ref)
    print("KERNEL_OK")
</pallas_src>

<mosaic_0001>
module attributes {stable_mosaic.version = 11 : i64} {
  func.func @network_kernel(%arg0: memref<1256x64xf32, #tpu.memory_space<vmem>>, %arg1: memref<8x128xf32, #tpu.memory_space<vmem>>) attributes {dimension_semantics = [], scalar_prefetch = 0 : i64, scratch_operands = 0 : i64, tpu.core_type = #tpu.core_type<tc>} {
    %c0 = arith.constant 0 : index
    %c0_0 = arith.constant 0 : index
    %0 = vector.load %arg0[%c0, %c0_0] : memref<1256x64xf32, #tpu.memory_space<vmem>>, vector<64x8xf32>
    %c80 = arith.constant 80 : index
    %c0_1 = arith.constant 0 : index
    %1 = vector.load %arg0[%c80, %c0_1] : memref<1256x64xf32, #tpu.memory_space<vmem>>, vector<8x8xf32>
    %cst = arith.constant dense<0.000000e+00> : vector<64x8xf32>
    %2 = tpu.matmul %0, %1, %cst {dimension_numbers = #tpu.dot_dimension_numbers<[1], [0], [0], [1], [0, 0, 1, 1], [], []>} : vector<64x8xf32>, vector<8x8xf32>, vector<64x8xf32> -> vector<64x8xf32>
    %c208 = arith.constant 208 : index
    %c0_2 = arith.constant 0 : index
    %3 = vector.load %arg0[%c208, %c0_2] : memref<1256x64xf32, #tpu.memory_space<vmem>>, vector<1x8xf32>
    %c209 = arith.constant 209 : index
    %c0_3 = arith.constant 0 : index
    %4 = vector.load %arg0[%c209, %c0_3] : memref<1256x64xf32, #tpu.memory_space<vmem>>, vector<1x8xf32>
    %5 = tpu.iota {dimensions = array<i32: 0>} : vector<64x8xi32>
    %c28_i32 = arith.constant 28 : i32
    %6 = vector.broadcast %c28_i32 : i32 to vector<64x8xi32>
    %7 = arith.cmpi slt, %5, %6 : vector<64x8xi32>
    %c32_i32 = arith.constant 32 : i32
    %8 = vector.broadcast %c32_i32 : i32 to vector<64x8xi32>
    %9 = arith.cmpi sge, %5, %8 : vector<64x8xi32>
    %c60_i32 = arith.constant 60 : i32
    %10 = vector.broadcast %c60_i32 : i32 to vector<64x8xi32>
    %11 = arith.cmpi slt, %5, %10 : vector<64x8xi32>
    %12 = arith.andi %9, %11 : vector<64x8xi1>
    %13 = arith.ori %7, %12 : vector<64x8xi1>
    %cst_4 = arith.constant 0.000000e+00 : f32
    %14 = vector.broadcast %cst_4 : f32 to vector<64x8xf32>
    %15 = arith.select %13, %2, %14 : vector<64x8xi1>, vector<64x8xf32>
    %cst_5 = arith.constant dense<0.000000e+00> : vector<8xf32>
    %16 = vector.multi_reduction <add>, %15, %cst_5 [0] : vector<64x8xf32> to vector<8xf32>
    %17 = vector.shape_cast %16 : vector<8xf32> to vector<1x8xf32>
    %cst_6 = arith.constant 0.0178571437 : f32
    %18 = vector.broadcast %cst_6 : f32 to vector<1x8xf32>
    %19 = arith.mulf %17, %18 : vector<1x8xf32>
    %20 = arith.mulf %15, %15 : vector<64x8xf32>
    %cst_7 = arith.constant dense<0.000000e+00> : vector<8xf32>
    %21 = vector.multi_reduction <add>, %20, %cst_7 [0] : vector<64x8xf32> to vector<8xf32>
    %22 = vector.shape_cast %21 : vector<8xf32> to vector<1x8xf32>
    %cst_8 = arith.constant 0.0178571437 : f32
    %23 = vector.broadcast %cst_8 : f32 to vector<1x8xf32>
    %24 = arith.mulf %22, %23 : vector<1x8xf32>
    %25 = arith.mulf %19, %19 : vector<1x8xf32>
    %26 = arith.subf %24, %25 : vector<1x8xf32>
    %cst_9 = arith.constant 9.99999974E-6 : f32
    %27 = vector.broadcast %cst_9 : f32 to vector<1x8xf32>
    %28 = arith.addf %26, %27 : vector<1x8xf32>
    %29 = math.rsqrt %28 : vector<1x8xf32>
    %30 = arith.mulf %29, %3 : vector<1x8xf32>
    %31 = arith.mulf %19, %30 : vector<1x8xf32>
    %32 = arith.subf %4, %31 : vector<1x8xf32>
    %33 = vector.broadcast %30 : vector<1x8xf32> to vector<64x8xf32>
    %34 = arith.mulf %2, %33 : vector<64x8xf32>
    %35 = vector.broadcast %32 : vector<1x8xf32> to vector<64x8xf32>
    %36 = arith.addf %34, %35 : vector<64x8xf32>
    %cst_10 = arith.constant 0.000000e+00 : f32
    %37 = vector.broadcast %cst_10 : f32 to vector<64x8xf32>
    %38 = arith.maximumf %36, %37 : vector<64x8xf32>
    %c88 = arith.constant 88 : index
    %c0_11 = arith.constant 0 : index
    %39 = vector.load %arg0[%c88, %c0_11] : memref<1256x64xf32, #tpu.memory_space<vmem>>, vector<8x16xf32>
    %40 = vector.extract_strided_slice %38 {offsets = [0, 0], sizes = [56, 8], strides = [1, 1]} : vector<64x8xf32> to vector<56x8xf32>
    %cst_12 = arith.constant dense<0.000000e+00> : vector<56x16xf32>
    %41 = tpu.matmul %40, %39, %cst_12 {dimension_numbers = #tpu.dot_dimension_numbers<[1], [0], [0], [1], [0, 0, 1, 1], [], []>} : vector<56x8xf32>, vector<8x16xf32>, vector<56x16xf32> -> vector<56x16xf32>
    %c96 = arith.constant 96 : index
    %c0_13 = arith.constant 0 : index
    %42 = vector.load %arg0[%c96, %c0_13] : memref<1256x64xf32, #tpu.memory_space<vmem>>, vector<8x16xf32>
    %43 = vector.extract_strided_slice %38 {offsets = [1, 0], sizes = [56, 8], strides = [1, 1]} : vector<64x8xf32> to vector<56x8xf32>
    %cst_14 = arith.constant dense<0.000000e+00> : vector<56x16xf32>
    %44 = tpu.matmul %43, %42, %cst_14 {dimension_numbers = #tpu.dot_dimension_numbers<[1], [0], [0], [1], [0, 0, 1, 1], [], []>} : vector<56x8xf32>, vector<8x16xf32>, vector<56x16xf32> -> vector<56x16xf32>
    %c104 = arith.constant 104 : index
    %c0_15 = arith.constant 0 : index
    %45 = vector.load %arg0[%c104, %c0_15] : memref<1256x64xf32, #tpu.memory_space<vmem>>, vector<8x16xf32>
    %46 = vector.extract_strided_slice %38 {offsets = [2, 0], sizes = [56, 8], strides = [1, 1]} : vector<64x8xf32> to vector<56x8xf32>
    %cst_16 = arith.constant dense<0.000000e+00> : vector<56x16xf32>
    %47 = tpu.matmul %46, %45, %cst_16 {dimension_numbers = #tpu.dot_dimension_numbers<[1], [0], [0], [1], [0, 0, 1, 1], [], []>} : vector<56x8xf32>, vector<8x16xf32>, vector<56x16xf32> -> vector<56x16xf32>
    %c112 = arith.constant 112 : index
    %c0_17 = arith.constant 0 : index
    %48 = vector.load %arg0[%c112, %c0_17] : memref<1256x64xf32, #tpu.memory_space<vmem>>, vector<8x16xf32>
    %49 = vector.extract_strided_slice %38 {offsets = [3, 0], sizes = [56, 8], strides = [1, 1]} : vector<64x8xf32> to vector<56x8xf32>
    %cst_18 = arith.constant dense<0.000000e+00> : vector<56x16xf32>
    %50 = tpu.matmul %49, %48, %cst_18 {dimension_numbers = #tpu.dot_dimension_numbers<[1], [0], [0], [1], [0, 0, 1, 1], [], []>} : vector<56x8xf32>, vector<8x16xf32>, vector<56x16xf32> -> vector<56x16xf32>
    %c120 = arith.constant 120 : index
    %c0_19 = arith.constant 0 : index
    %51 = vector.load %arg0[%c120, %c0_19] : memref<1256x64xf32, #tpu.memory_space<vmem>>, vector<8x16xf32>
    %52 = vector.extract_strided_slice %38 {offsets = [4, 0], sizes = [56, 8], strides = [1, 1]} : vector<64x8xf32> to vector<56x8xf32>
    %cst_20 = arith.constant dense<0.000000e+00> : vector<56x16xf32>
    %53 = tpu.matmul %52, %51, %cst_20 {dimension_numbers = #tpu.dot_dimension_numbers<[1], [0], [0], [1], [0, 0, 1, 1], [], []>} : vector<56x8xf32>, vector<8x16xf32>, vector<56x16xf32> -> vector<56x16xf32>
    %54 = arith.addf %41, %44 : vector<56x16xf32>
    %55 = arith.addf %47, %50 : vector<56x16xf32>
    %56 = arith.addf %54, %55 : vector<56x16xf32>
    %57 = arith.addf %56, %53 : vector<56x16xf32>
    %c210 = arith.constant 210 : index
    %c0_21 = arith.constant 0 : index
    %58 = vector.load %arg0[%c210, %c0_21] : memref<1256x64xf32, #tpu.memory_space<vmem>>, vector<1x16xf32>
    %c211 = arith.constant 211 : index
    %c0_22 = arith.constant 0 : index
    %59 = vector.load %arg0[%c211, %c0_22] : memref<1256x64xf32, #tpu.memory_space<vmem>>, vector<1x16xf32>
    %60 = tpu.iota {dimensions = array<i32: 0>} : vector<56x16xi32>
    %c24_i32 = arith.constant 24 : i32
    %61 = vector.broadcast %c24_i32 : i32 to vector<56x16xi32>
    %62 = arith.cmpi slt, %60, %61 : vector<56x16xi32>
    %c32_i32_23 = arith.constant 32 : i32
    %63 = vector.broadcast %c32_i32_23 : i32 to vector<56x16xi32>
    %64 = arith.cmpi sge, %60, %63 : vector<56x16xi32>
    %c56_i32 = arith.constant 56 : i32
    %65 = vector.broadcast %c56_i32 : i32 to vector<56x16xi32>
    %66 = arith.cmpi slt, %60, %65 : vector<56x16xi32>
    %67 = arith.andi %64, %66 : vector<56x16xi1>
    %68 = arith.ori %62, %67 : vector<56x16xi1>
    %cst_24 = arith.constant 0.000000e+00 : f32
    %69 = vector.broadcast %cst_24 : f32 to vector<56x16xf32>
    %70 = arith.select %68, %57, %69 : vector<56x16xi1>, vector<56x16xf32>
    %cst_25 = arith.constant dense<0.000000e+00> : vector<16xf32>
    %71 = vector.multi_reduction <add>, %70, %cst_25 [0] : vector<56x16xf32> to vector<16xf32>
    %72 = vector.shape_cast %71 : vector<16xf32> to vector<1x16xf32>
    %cst_26 = arith.constant 0.020833334 : f32
    %73 = vector.broadcast %cst_26 : f32 to vector<1x16xf32>
    %74 = arith.mulf %72, %73 : vector<1x16xf32>
    %75 = arith.mulf %70, %70 : vector<56x16xf32>
    %cst_27 = arith.constant dense<0.000000e+00> : vector<16xf32>
    %76 = vector.multi_reduction <add>, %75, %cst_27 [0] : vector<56x16xf32> to vector<16xf32>
    %77 = vector.shape_cast %76 : vector<16xf32> to vector<1x16xf32>
    %cst_28 = arith.constant 0.020833334 : f32
    %78 = vector.broadcast %cst_28 : f32 to vector<1x16xf32>
    %79 = arith.mulf %77, %78 : vector<1x16xf32>
    %80 = arith.mulf %74, %74 : vector<1x16xf32>
    %81 = arith.subf %79, %80 : vector<1x16xf32>
    %cst_29 = arith.constant 9.99999974E-6 : f32
    %82 = vector.broadcast %cst_29 : f32 to vector<1x16xf32>
    %83 = arith.addf %81, %82 : vector<1x16xf32>
    %84 = math.rsqrt %83 : vector<1x16xf32>
    %85 = arith.mulf %84, %58 : vector<1x16xf32>
    %86 = arith.mulf %74, %85 : vector<1x16xf32>
    %87 = arith.subf %59, %86 : vector<1x16xf32>
    %88 = vector.broadcast %85 : vector<1x16xf32> to vector<56x16xf32>
    %89 = arith.mulf %57, %88 : vector<56x16xf32>
    %90 = vector.broadcast %87 : vector<1x16xf32> to vector<56x16xf32>
    %91 = arith.addf %89, %90 : vector<56x16xf32>
    %cst_30 = arith.constant 0.000000e+00 : f32
    %92 = vector.broadcast %cst_30 : f32 to vector<56x16xf32>
    %93 = arith.maximumf %91, %92 : vector<56x16xf32>
    %c128 = arith.constant 128 : index
    %c0_31 = arith.constant 0 : index
    %94 = vector.load %arg0[%c128, %c0_31] : memref<1256x64xf32, #tpu.memory_space<vmem>>, vector<16x16xf32>
    %95 = vector.extract_strided_slice %93 {offsets = [0, 0], sizes = [52, 16], strides = [1, 1]} : vector<56x16xf32> to vector<52x16xf32>
    %cst_32 = arith.constant dense<0.000000e+00> : vector<52x16xf32>
    %96 = tpu.matmul %95, %94, %cst_32 {dimension_numbers = #tpu.dot_dimension_numbers<[1], [0], [0], [1], [0, 0, 1, 1], [], []>} : vector<52x16xf32>, vector<16x16xf32>, vector<52x16xf32> -> vector<52x16xf32>
    %c144 = arith.constant 144 : index
    %c0_33 = arith.constant 0 : index
    %97 = vector.load %arg0[%c144, %c0_33] : memref<1256x64xf32, #tpu.memory_space<vmem>>, vector<16x16xf32>
    %98 = vector.extract_strided_slice %93 {offsets = [1, 0], sizes = [52, 16], strides = [1, 1]} : vector<56x16xf32> to vector<52x16xf32>
    %cst_34 = arith.constant dense<0.000000e+00> : vector<52x16xf32>
    %99 = tpu.matmul %98, %97, %cst_34 {dimension_numbers = #tpu.dot_dimension_numbers<[1], [0], [0], [1], [0, 0, 1, 1], [], []>} : vector<52x16xf32>, vector<16x16xf32>, vector<52x16xf32> -> vector<52x16xf32>
    %c160 = arith.constant 160 : index
    %c0_35 = arith.constant 0 : index
    %100 = vector.load %arg0[%c160, %c0_35] : memref<1256x64xf32, #tpu.memory_space<vmem>>, vector<16x16xf32>
    %101 = vector.extract_strided_slice %93 {offsets = [2, 0], sizes = [52, 16], strides = [1, 1]} : vector<56x16xf32> to vector<52x16xf32>
    %cst_36 = arith.constant dense<0.000000e+00> : vector<52x16xf32>
    %102 = tpu.matmul %101, %100, %cst_36 {dimension_numbers = #tpu.dot_dimension_numbers<[1], [0], [0], [1], [0, 0, 1, 1], [], []>} : vector<52x16xf32>, vector<16x16xf32>, vector<52x16xf32> -> vector<52x16xf32>
    %c176 = arith.constant 176 : index
    %c0_37 = arith.constant 0 : index
    %103 = vector.load %arg0[%c176, %c0_37] : memref<1256x64xf32, #tpu.memory_space<vmem>>, vector<16x16xf32>
    %104 = vector.extract_strided_slice %93 {offsets = [3, 0], sizes = [52, 16], strides = [1, 1]} : vector<56x16xf32> to vector<52x16xf32>
    %cst_38 = arith.constant dense<0.000000e+00> : vector<52x16xf32>
    %105 = tpu.matmul %104, %103, %cst_38 {dimension_numbers = #tpu.dot_dimension_numbers<[1], [0], [0], [1], [0, 0, 1, 1], [], []>} : vector<52x16xf32>, vector<16x16xf32>, vector<52x16xf32> -> vector<52x16xf32>
    %c192 = arith.constant 192 : index
    %c0_39 = arith.constant 0 : index
    %106 = vector.load %arg0[%c192, %c0_39] : memref<1256x64xf32, #tpu.memory_space<vmem>>, vector<16x16xf32>
    %107 = vector.extract_strided_slice %93 {offsets = [4, 0], sizes = [52, 16], strides = [1, 1]} : vector<56x16xf32> to vector<52x16xf32>
    %cst_40 = arith.constant dense<0.000000e+00> : vector<52x16xf32>
    %108 = tpu.matmul %107, %106, %cst_40 {dimension_numbers = #tpu.dot_dimension_numbers<[1], [0], [0], [1], [0, 0, 1, 1], [], []>} : vector<52x16xf32>, vector<16x16xf32>, vector<52x16xf32> -> vector<52x16xf32>
    %109 = arith.addf %96, %99 : vector<52x16xf32>
    %110 = arith.addf %102, %105 : vector<52x16xf32>
    %111 = arith.addf %109, %110 : vector<52x16xf32>
    %112 = arith.addf %111, %108 : vector<52x16xf32>
    %c212 = arith.constant 212 : index
    %c0_41 = arith.constant 0 : index
    %113 = vector.load %arg0[%c212, %c0_41] : memref<1256x64xf32, #tpu.memory_space<vmem>>, vector<1x16xf32>
    %c213 = arith.constant 213 : index
    %c0_42 = arith.constant 0 : index
    %114 = vector.load %arg0[%c213, %c0_42] : memref<1256x64xf32, #tpu.memory_space<vmem>>, vector<1x16xf32>
    %115 = tpu.iota {dimensions = array<i32: 0>} : vector<52x16xi32>
    %c20_i32 = arith.constant 20 : i32
    %116 = vector.broadcast %c20_i32 : i32 to vector<52x16xi32>
    %117 = arith.cmpi slt, %115, %116 : vector<52x16xi32>
    %c32_i32_43 = arith.constant 32 : i32
    %118 = vector.broadcast %c32_i32_43 : i32 to vector<52x16xi32>
    %119 = arith.cmpi sge, %115, %118 : vector<52x16xi32>
    %c52_i32 = arith.constant 52 : i32
    %120 = vector.broadcast %c52_i32 : i32 to vector<52x16xi32>
    %121 = arith.cmpi slt, %115, %120 : vector<52x16xi32>
    %122 = arith.andi %119, %121 : vector<52x16xi1>
    %123 = arith.ori %117, %122 : vector<52x16xi1>
    %cst_44 = arith.constant 0.000000e+00 : f32
    %124 = vector.broadcast %cst_44 : f32 to vector<52x16xf32>
    %125 = arith.select %123, %112, %124 : vector<52x16xi1>, vector<52x16xf32>
    %cst_45 = arith.constant dense<0.000000e+00> : vector<16xf32>
    %126 = vector.multi_reduction <add>, %125, %cst_45 [0] : vector<52x16xf32> to vector<16xf32>
    %127 = vector.shape_cast %126 : vector<16xf32> to vector<1x16xf32>
    %cst_46 = arith.constant 2.500000e-02 : f32
    %128 = vector.broadcast %cst_46 : f32 to vector<1x16xf32>
    %129 = arith.mulf %127, %128 : vector<1x16xf32>
    %130 = arith.mulf %125, %125 : vector<52x16xf32>
    %cst_47 = arith.constant dense<0.000000e+00> : vector<16xf32>
    %131 = vector.multi_reduction <add>, %130, %cst_47 [0] : vector<52x16xf32> to vector<16xf32>
    %132 = vector.shape_cast %131 : vector<16xf32> to vector<1x16xf32>
    %cst_48 = arith.constant 2.500000e-02 : f32
    %133 = vector.broadcast %cst_48 : f32 to vector<1x16xf32>
    %134 = arith.mulf %132, %133 : vector<1x16xf32>
    %135 = arith.mulf %129, %129 : vector<1x16xf32>
    %136 = arith.subf %134, %135 : vector<1x16xf32>
    %cst_49 = arith.constant 9.99999974E-6 : f32
    %137 = vector.broadcast %cst_49 : f32 to vector<1x16xf32>
    %138 = arith.addf %136, %137 : vector<1x16xf32>
    %139 = math.rsqrt %138 : vector<1x16xf32>
    %140 = arith.mulf %139, %113 : vector<1x16xf32>
    %141 = arith.mulf %129, %140 : vector<1x16xf32>
    %142 = arith.subf %114, %141 : vector<1x16xf32>
    %143 = vector.broadcast %140 : vector<1x16xf32> to vector<52x16xf32>
    %144 = arith.mulf %112, %143 : vector<52x16xf32>
    %145 = vector.broadcast %142 : vector<1x16xf32> to vector<52x16xf32>
    %146 = arith.addf %144, %145 : vector<52x16xf32>
    %cst_50 = arith.constant 0.000000e+00 : f32
    %147 = vector.broadcast %cst_50 : f32 to vector<52x16xf32>
    %148 = arith.maximumf %146, %147 : vector<52x16xf32>
    %149 = vector.extract_strided_slice %148 {offsets = [0, 0], sizes = [52, 1], strides = [1, 1]} : vector<52x16xf32> to vector<52x1xf32>
    %c360 = arith.constant 360 : index
    %c0_51 = arith.constant 0 : index
    %150 = vector.load %arg0[%c360, %c0_51] : memref<1256x64xf32, #tpu.memory_space<vmem>>, vector<52x64xf32>
    %151 = vector.broadcast %149 : vector<52x1xf32> to vector<52x64xf32>
    %152 = arith.mulf %151, %150 : vector<52x64xf32>
    %153 = vector.extract_strided_slice %148 {offsets = [0, 1], sizes = [52, 1], strides = [1, 1]} : vector<52x16xf32> to vector<52x1xf32>
    %c416 = arith.constant 416 : index
    %c0_52 = arith.constant 0 : index
    %154 = vector.load %arg0[%c416, %c0_52] : memref<1256x64xf32, #tpu.memory_space<vmem>>, vector<52x64xf32>
    %155 = vector.broadcast %153 : vector<52x1xf32> to vector<52x64xf32>
    %156 = arith.mulf %155, %154 : vector<52x64xf32>
    %157 = vector.extract_strided_slice %148 {offsets = [0, 2], sizes = [52, 1], strides = [1, 1]} : vector<52x16xf32> to vector<52x1xf32>
    %c472 = arith.constant 472 : index
    %c0_53 = arith.constant 0 : index
    %158 = vector.load %arg0[%c472, %c0_53] : memref<1256x64xf32, #tpu.memory_space<vmem>>, vector<52x64xf32>
    %159 = vector.broadcast %157 : vector<52x1xf32> to vector<52x64xf32>
    %160 = arith.mulf %159, %158 : vector<52x64xf32>
    %161 = vector.extract_strided_slice %148 {offsets = [0, 3], sizes = [52, 1], strides = [1, 1]} : vector<52x16xf32> to vector<52x1xf32>
    %c528 = arith.constant 528 : index
    %c0_54 = arith.constant 0 : index
    %162 = vector.load %arg0[%c528, %c0_54] : memref<1256x64xf32, #tpu.memory_space<vmem>>, vector<52x64xf32>
    %163 = vector.broadcast %161 : vector<52x1xf32> to vector<52x64xf32>
    %164 = arith.mulf %163, %162 : vector<52x64xf32>
    %165 = vector.extract_strided_slice %148 {offsets = [0, 4], sizes = [52, 1], strides = [1, 1]} : vector<52x16xf32> to vector<52x1xf32>
    %c584 = arith.constant 584 : index
    %c0_55 = arith.constant 0 : index
    %166 = vector.load %arg0[%c584, %c0_55] : memref<1256x64xf32, #tpu.memory_space<vmem>>, vector<52x64xf32>
    %167 = vector.broadcast %165 : vector<52x1xf32> to vector<52x64xf32>
    %168 = arith.mulf %167, %166 : vector<52x64xf32>
    %169 = vector.extract_strided_slice %148 {offsets = [0, 5], sizes = [52, 1], strides = [1, 1]} : vector<52x16xf32> to vector<52x1xf32>
    %c640 = arith.constant 640 : index
    %c0_56 = arith.constant 0 : index
    %170 = vector.load %arg0[%c640, %c0_56] : memref<1256x64xf32, #tpu.memory_space<vmem>>, vector<52x64xf32>
    %171 = vector.broadcast %169 : vector<52x1xf32> to vector<52x64xf32>
    %172 = arith.mulf %171, %170 : vector<52x64xf32>
    %173 = vector.extract_strided_slice %148 {offsets = [0, 6], sizes = [52, 1], strides = [1, 1]} : vector<52x16xf32> to vector<52x1xf32>
    %c696 = arith.constant 696 : index
    %c0_57 = arith.constant 0 : index
    %174 = vector.load %arg0[%c696, %c0_57] : memref<1256x64xf32, #tpu.memory_space<vmem>>, vector<52x64xf32>
    %175 = vector.broadcast %173 : vector<52x1xf32> to vector<52x64xf32>
    %176 = arith.mulf %175, %174 : vector<52x64xf32>
    %177 = vector.extract_strided_slice %148 {offsets = [0, 7], sizes = [52, 1], strides = [1, 1]} : vector<52x16xf32> to vector<52x1xf32>
    %c752 = arith.constant 752 : index
    %c0_58 = arith.constant 0 : index
    %178 = vector.load %arg0[%c752, %c0_58] : memref<1256x64xf32, #tpu.memory_space<vmem>>, vector<52x64xf32>
    %179 = vector.broadcast %177 : vector<52x1xf32> to vector<52x64xf32>
    %180 = arith.mulf %179, %178 : vector<52x64xf32>
    %181 = vector.extract_strided_slice %148 {offsets = [0, 8], sizes = [52, 1], strides = [1, 1]} : vector<52x16xf32> to vector<52x1xf32>
    %c808 = arith.constant 808 : index
    %c0_59 = arith.constant 0 : index
    %182 = vector.load %arg0[%c808, %c0_59] : memref<1256x64xf32, #tpu.memory_space<vmem>>, vector<52x64xf32>
    %183 = vector.broadcast %181 : vector<52x1xf32> to vector<52x64xf32>
    %184 = arith.mulf %183, %182 : vector<52x64xf32>
    %185 = vector.extract_strided_slice %148 {offsets = [0, 9], sizes = [52, 1], strides = [1, 1]} : vector<52x16xf32> to vector<52x1xf32>
    %c864 = arith.constant 864 : index
    %c0_60 = arith.constant 0 : index
    %186 = vector.load %arg0[%c864, %c0_60] : memref<1256x64xf32, #tpu.memory_space<vmem>>, vector<52x64xf32>
    %187 = vector.broadcast %185 : vector<52x1xf32> to vector<52x64xf32>
    %188 = arith.mulf %187, %186 : vector<52x64xf32>
    %189 = vector.extract_strided_slice %148 {offsets = [0, 10], sizes = [52, 1], strides = [1, 1]} : vector<52x16xf32> to vector<52x1xf32>
    %c920 = arith.constant 920 : index
    %c0_61 = arith.constant 0 : index
    %190 = vector.load %arg0[%c920, %c0_61] : memref<1256x64xf32, #tpu.memory_space<vmem>>, vector<52x64xf32>
    %191 = vector.broadcast %189 : vector<52x1xf32> to vector<52x64xf32>
    %192 = arith.mulf %191, %190 : vector<52x64xf32>
    %193 = vector.extract_strided_slice %148 {offsets = [0, 11], sizes = [52, 1], strides = [1, 1]} : vector<52x16xf32> to vector<52x1xf32>
    %c976 = arith.constant 976 : index
    %c0_62 = arith.constant 0 : index
    %194 = vector.load %arg0[%c976, %c0_62] : memref<1256x64xf32, #tpu.memory_space<vmem>>, vector<52x64xf32>
    %195 = vector.broadcast %193 : vector<52x1xf32> to vector<52x64xf32>
    %196 = arith.mulf %195, %194 : vector<52x64xf32>
    %197 = vector.extract_strided_slice %148 {offsets = [0, 12], sizes = [52, 1], strides = [1, 1]} : vector<52x16xf32> to vector<52x1xf32>
    %c1032 = arith.constant 1032 : index
    %c0_63 = arith.constant 0 : index
    %198 = vector.load %arg0[%c1032, %c0_63] : memref<1256x64xf32, #tpu.memory_space<vmem>>, vector<52x64xf32>
    %199 = vector.broadcast %197 : vector<52x1xf32> to vector<52x64xf32>
    %200 = arith.mulf %199, %198 : vector<52x64xf32>
    %201 = vector.extract_strided_slice %148 {offsets = [0, 13], sizes = [52, 1], strides = [1, 1]} : vector<52x16xf32> to vector<52x1xf32>
    %c1088 = arith.constant 1088 : index
    %c0_64 = arith.constant 0 : index
    %202 = vector.load %arg0[%c1088, %c0_64] : memref<1256x64xf32, #tpu.memory_space<vmem>>, vector<52x64xf32>
    %203 = vector.broadcast %201 : vector<52x1xf32> to vector<52x64xf32>
    %204 = arith.mulf %203, %202 : vector<52x64xf32>
    %205 = vector.extract_strided_slice %148 {offsets = [0, 14], sizes = [52, 1], strides = [1, 1]} : vector<52x16xf32> to vector<52x1xf32>
    %c1144 = arith.constant 1144 : index
    %c0_65 = arith.constant 0 : index
    %206 = vector.load %arg0[%c1144, %c0_65] : memref<1256x64xf32, #tpu.memory_space<vmem>>, vector<52x64xf32>
    %207 = vector.broadcast %205 : vector<52x1xf32> to vector<52x64xf32>
    %208 = arith.mulf %207, %206 : vector<52x64xf32>
    %209 = vector.extract_strided_slice %148 {offsets = [0, 15], sizes = [52, 1], strides = [1, 1]} : vector<52x16xf32> to vector<52x1xf32>
    %c1200 = arith.constant 1200 : index
    %c0_66 = arith.constant 0 : index
    %210 = vector.load %arg0[%c1200, %c0_66] : memref<1256x64xf32, #tpu.memory_space<vmem>>, vector<52x64xf32>
    %211 = vector.broadcast %209 : vector<52x1xf32> to vector<52x64xf32>
    %212 = arith.mulf %211, %210 : vector<52x64xf32>
    %213 = arith.addf %152, %156 : vector<52x64xf32>
    %214 = arith.addf %160, %164 : vector<52x64xf32>
    %215 = arith.addf %168, %172 : vector<52x64xf32>
    %216 = arith.addf %176, %180 : vector<52x64xf32>
    %217 = arith.addf %184, %188 : vector<52x64xf32>
    %218 = arith.addf %192, %196 : vector<52x64xf32>
    %219 = arith.addf %200, %204 : vector<52x64xf32>
    %220 = arith.addf %208, %212 : vector<52x64xf32>
    %221 = arith.addf %213, %214 : vector<52x64xf32>
    %222 = arith.addf %215, %216 : vector<52x64xf32>
    %223 = arith.addf %217, %218 : vector<52x64xf32>
    %224 = arith.addf %219, %220 : vector<52x64xf32>
    %225 = arith.addf %221, %222 : vector<52x64xf32>
    %226 = arith.addf %223, %224 : vector<52x64xf32>
    %227 = arith.addf %225, %226 : vector<52x64xf32>
    %c64 = arith.constant 64 : index
    %c0_67 = arith.constant 0 : index
    %228 = vector.load %arg0[%c64, %c0_67] : memref<1256x64xf32, #tpu.memory_space<vmem>>, vector<2x52xf32>
    %cst_68 = arith.constant dense<0.000000e+00> : vector<2x64xf32>
    %229 = tpu.matmul %228, %227, %cst_68 {dimension_numbers = #tpu.dot_dimension_numbers<[1], [0], [0], [1], [0, 0, 1, 1], [], []>} : vector<2x52xf32>, vector<52x64xf32>, vector<2x64xf32> -> vector<2x64xf32>
    %c72 = arith.constant 72 : index
    %c0_69 = arith.constant 0 : index
    %230 = vector.load %arg0[%c72, %c0_69] : memref<1256x64xf32, #tpu.memory_space<vmem>>, vector<2x2xf32>
    %c224 = arith.constant 224 : index
    %c0_70 = arith.constant 0 : index
    %231 = vector.load %arg0[%c224, %c0_70] : memref<1256x64xf32, #tpu.memory_space<vmem>>, vector<1x64xf32>
    %c225 = arith.constant 225 : index
    %c0_71 = arith.constant 0 : index
    %232 = vector.load %arg0[%c225, %c0_71] : memref<1256x64xf32, #tpu.memory_space<vmem>>, vector<1x64xf32>
    %233 = vector.extract_strided_slice %230 {offsets = [0, 0], sizes = [2, 1], strides = [1, 1]} : vector<2x2xf32> to vector<2x1xf32>
    %234 = vector.broadcast %233 : vector<2x1xf32> to vector<2x64xf32>
    %235 = vector.broadcast %231 : vector<1x64xf32> to vector<2x64xf32>
    %236 = arith.mulf %234, %235 : vector<2x64xf32>
    %237 = vector.extract_strided_slice %230 {offsets = [0, 1], sizes = [2, 1], strides = [1, 1]} : vector<2x2xf32> to vector<2x1xf32>
    %238 = vector.broadcast %237 : vector<2x1xf32> to vector<2x64xf32>
    %239 = vector.broadcast %232 : vector<1x64xf32> to vector<2x64xf32>
    %240 = arith.mulf %238, %239 : vector<2x64xf32>
    %241 = arith.addf %236, %240 : vector<2x64xf32>
    %c214 = arith.constant 214 : index
    %c0_72 = arith.constant 0 : index
    %242 = vector.load %arg0[%c214, %c0_72] : memref<1256x64xf32, #tpu.memory_space<vmem>>, vector<1x64xf32>
    %243 = vector.broadcast %242 : vector<1x64xf32> to vector<2x64xf32>
    %244 = arith.addf %241, %243 : vector<2x64xf32>
    %cst_73 = arith.constant 0.000000e+00 : f32
    %245 = vector.broadcast %cst_73 : f32 to vector<2x64xf32>
    %246 = arith.maximumf %244, %245 : vector<2x64xf32>
    %c232 = arith.constant 232 : index
    %c0_74 = arith.constant 0 : index
    %247 = vector.load %arg0[%c232, %c0_74] : memref<1256x64xf32, #tpu.memory_space<vmem>>, vector<64x64xf32>
    %cst_75 = arith.constant dense<0.000000e+00> : vector<2x64xf32>
    %248 = tpu.matmul %246, %247, %cst_75 {dimension_numbers = #tpu.dot_dimension_numbers<[1], [0], [0], [1], [0, 0, 1, 1], [], []>} : vector<2x64xf32>, vector<64x64xf32>, vector<2x64xf32> -> vector<2x64xf32>
    %249 = arith.addf %229, %248 : vector<2x64xf32>
    %c215 = arith.constant 215 : index
    %c0_76 = arith.constant 0 : index
    %250 = vector.load %arg0[%c215, %c0_76] : memref<1256x64xf32, #tpu.memory_space<vmem>>, vector<1x64xf32>
    %251 = vector.broadcast %250 : vector<1x64xf32> to vector<2x64xf32>
    %252 = arith.addf %249, %251 : vector<2x64xf32>
    %cst_77 = arith.constant 0.000000e+00 : f32
    %253 = vector.broadcast %cst_77 : f32 to vector<2x64xf32>
    %254 = arith.maximumf %252, %253 : vector<2x64xf32>
    %c296 = arith.constant 296 : index
    %c0_78 = arith.constant 0 : index
    %255 = vector.load %arg0[%c296, %c0_78] : memref<1256x64xf32, #tpu.memory_space<vmem>>, vector<64x3xf32>
    %cst_79 = arith.constant dense<0.000000e+00> : vector<2x3xf32>
    %256 = tpu.matmul %254, %255, %cst_79 {dimension_numbers = #tpu.dot_dimension_numbers<[1], [0], [0], [1], [0, 0, 1, 1], [], []>} : vector<2x64xf32>, vector<64x3xf32>, vector<2x3xf32> -> vector<2x3xf32>
    %c216 = arith.constant 216 : index
    %c0_80 = arith.constant 0 : index
    %257 = vector.load %arg0[%c216, %c0_80] : memref<1256x64xf32, #tpu.memory_space<vmem>>, vector<1x3xf32>
    %258 = vector.broadcast %257 : vector<1x3xf32> to vector<2x3xf32>
    %259 = arith.addf %256, %258 : vector<2x3xf32>
    %cst_81 = arith.constant dense<0xFF800000> : vector<2xf32>
    %260 = vector.multi_reduction <maximumf>, %259, %cst_81 [1] : vector<2x3xf32> to vector<2xf32>
    %261 = vector.shape_cast %260 : vector<2xf32> to vector<2x1xf32>
    %262 = vector.broadcast %261 : vector<2x1xf32> to vector<2x3xf32>
    %263 = arith.subf %259, %262 : vector<2x3xf32>
    %264 = math.exp %263 : vector<2x3xf32>
    %cst_82 = arith.constant dense<0.000000e+00> : vector<2xf32>
    %265 = vector.multi_reduction <add>, %264, %cst_82 [1] : vector<2x3xf32> to vector<2xf32>
    %266 = vector.shape_cast %265 : vector<2xf32> to vector<2x1xf32>
    %267 = vector.broadcast %266 : vector<2x1xf32> to vector<2x3xf32>
    %268 = arith.divf %264, %267 : vector<2x3xf32>
    %cst_83 = arith.constant 0.000000e+00 : f32
    %269 = vector.broadcast %cst_83 : f32 to vector<8x128xf32>
    %c0_84 = arith.constant 0 : index
    %c0_85 = arith.constant 0 : index
    %270 = vector.load %arg1[%c0_84, %c0_85] : memref<8x128xf32, #tpu.memory_space<vmem>>, vector<8x128xf32>
    tpu.vector_store %arg1[%c0_84, %c0_85], %269 {strides = array<i32>} : memref<8x128xf32, #tpu.memory_space<vmem>>, vector<8x128xf32>,
    %c0_86 = arith.constant 0 : index
    %c0_87 = arith.constant 0 : index
    %271 = vector.load %arg1[%c0_86, %c0_87] : memref<8x128xf32, #tpu.memory_space<vmem>>, vector<2x3xf32>
    tpu.vector_store %arg1[%c0_86, %c0_87], %268 {strides = array<i32>} : memref<8x128xf32, #tpu.memory_space<vmem>>, vector<2x3xf32>,
    return
  }
}

</mosaic_0001>

<bundles_post_ra>
// kernel: tpu_custom_call.1
= control target key start
LH: loop header
LB: loop body
LE: loop exit
PB: predicated region body
PF: predicated region fallthrough
CT: control target
= control target key end

     0   :  { %vm18_vm0 = vcmask 64512   ;;  %s3576_s0 = inlined_call_operand.vmem [shape: f32[1256,64], index: 0, kind: input, shape index: {}]   ;;  %s3577_s1 = inlined_call_operand.hbm [shape: f32[8,128], index: 1, kind: output, shape index: {}]  }
   0x1   :  { %v17_v0 = vld [vmem:[%s3576_s0 + $0x50] sm:$0xff]  ;;  %v9_v1 = vld [vmem:[%s3576_s0] sm:$0xff] }
   0x2   :  { %58 = vmatpush.msra.mxu0 %v17_v0 }
   0x3   :  { %2124 = vmatmul.msk.f32.vlgmr.msra.gmra.mxu0 %vm18_vm0, %v9_v1 }
   0x4   :  { %6 = vsyncpa [#allocation3], 0  ;;  %v10_v2 = vld [vmem:[%s3576_s0 + $0x8] sm:$0xff]  ;;  %v11_v3 = vld [vmem:[%s3576_s0 + $0x10] sm:$0xff]  ;;  %v86_v13 = vlaneseq  ;;  %vm247_vm6 = vcmask 1046528   ;;  %vm317_vm7 = vcmask 1044480  }
   0x5   :  { %v12_v4 = vld [vmem:[%s3576_s0 + $0x18] sm:$0xff]  ;;  %v13_v5 = vld [vmem:[%s3576_s0 + $0x20] sm:$0xff]  ;;  %v14_v6 = vld [vmem:[%s3576_s0 + $0x28] sm:$0xff]  ;;  %vm386_vm8 = vcmask 1043456   ;;  %vm506_vm9 = vcmask 1045504   ;;  %vm625_vm10 = vcmask 130048  }
   0x6   :  { %v15_v7 = vld [vmem:[%s3576_s0 + $0x30] sm:$0xff]  ;;  %v16_v8 = vld [vmem:[%s3576_s0 + $0x38] sm:$0xff]  ;;  %v2425_v14 = vshrl.u32 %v86_v13, 7  ;;  %s2115_s20 = sshll.u32 %s3577_s1, 4  ;;  %s2116_s20 = int_to_ptr.hbm [resolvable:$true] %s2115_s20 }
   0x8   :  { %v90_v16 = vadd.s32 24, %v2425_v14  ;;  %v94_v38 = vadd.s32 56, %v2425_v14 }
   0xa   :  { %vm98_vm1 = vcmp.lt.s32.totalorder %v90_v16, 28  ;;  %vm118_vm2 = vcmp.lt.s32.totalorder %v94_v38, 60 }
   0xb   :  { %2125 = vmatmul.msk.f32.gmra.mxu0 %vm18_vm0, %v10_v2 }
  0x13   :  { %2126 = vmatmul.msk.f32.gmra.mxu0 %vm18_vm0, %v11_v3 }
  0x1b   :  { %2127 = vmatmul.msk.f32.gmra.mxu0 %vm18_vm0, %v12_v4 }
  0x23   :  { %2128 = vmatmul.msk.f32.gmra.mxu0 %vm18_vm0, %v13_v5 }
  0x2b   :  { %2129 = vmatmul.msk.f32.gmra.mxu0 %vm18_vm0, %v14_v6 }
  0x33   :  { %2130 = vmatmul.msk.f32.gmra.mxu0 %vm18_vm0, %v15_v7 }
  0x3b   :  { %2131 = vmatmul.msk.f32.gmra.mxu0 %vm18_vm0, %v16_v8 }
  0x80   :  { %v2417_v9 = vpop.f32.mrf.mxu0 }
  0x81   :  { %v165_v20 = vmul.f32 %v2417_v9, %v2417_v9  ;;  %v143_v23 = vsel %vm18_vm0, %v2417_v9, 0.0 }
  0x83   :  { %v173_v28 = vsel %vm18_vm0, %v165_v20, 0.0  ;;  %v238_v20 = vld [vmem:[%s3576_s0 + $0x60] sm:$0xff] }
  0x84   :  { %292 = vmatpush.msra.mxu1 %v238_v20 }
  0x88   :  { %v2419_v10 = vpop.f32.mrf.mxu0 }
  0x89   :  { %v166_v18 = vmul.f32 %v2419_v10, %v2419_v10  ;;  %v144_v21 = vsel %vm18_vm0, %v2419_v10, 0.0 }
  0x8a   :  { %v145_v27 = vadd.f32 %v144_v21, %v143_v23  ;;  %v316_v21 = vld [vmem:[%s3576_s0 + $0x70] sm:$0xff] }
  0x8b   :  { %v174_v24 = vsel %vm18_vm0, %v166_v18, 0.0  ;;  %362 = vmatpush.msra.mxu2 %v316_v21 }
  0x8c   :  { %v175_v33 = vadd.f32 %v174_v24, %v173_v28  ;;  %v315_v24 = vld [vmem:[%s3576_s0 + $0x68] sm:$0xff] }
  0x8d   :  { %551 = vmatpush.msrb.mxu2 %v315_v24 }
  0x90   :  { %v2421_v11 = vpop.f32.mrf.mxu0 }
  0x91   :  { %v167_v22 = vmul.f32 %v2421_v11, %v2421_v11  ;;  %v146_v25 = vsel %vm18_vm0, %v2421_v11, 0.0 }
  0x92   :  { %v147_v34 = vadd.f32 %v146_v25, %v145_v27  ;;  %v237_v25 = vld [vmem:[%s3576_s0 + $0x58] sm:$0xff] }
  0x93   :  { %v176_v29 = vsel %vm18_vm0, %v167_v22, 0.0  ;;  %v385_v22 = vld [vmem:[%s3576_s0 + $0x78] sm:$0xff]  ;;  %483 = vmatpush.msrb.mxu1 %v237_v25 }
  0x94   :  { %v177_v39 = vadd.f32 %v176_v29, %v175_v33  ;;  %431 = vmatpush.msra.mxu3 %v385_v22 }
  0x98   :  { %v2423_v12 = vpop.f32.mrf.mxu0 }
  0x99   :  { %v138_v19 = vsel %vm98_vm1, %v2423_v12, 0.0 }
  0x9a   :  { %v168_v26 = vmul.f32 %v138_v19, %v138_v19  ;;  %v148_v30 = vsel %vm18_vm0, %v138_v19, 0.0 }
  0x9b   :  { %v149_v40 = vadd.f32 %v148_v30, %v147_v34 }
  0x9c   :  { %v178_v35 = vsel %vm18_vm0, %v168_v26, 0.0 }
  0x9d   :  { %v179_v44 = vadd.f32 %v178_v35, %v177_v39 }
  0xa0   :  { %v2427_v15 = vpop.f32.mrf.mxu0 }
  0xa1   :  { %v169_v31 = vmul.f32 %v2427_v15, %v2427_v15  ;;  %v150_v36 = vsel %vm18_vm0, %v2427_v15, 0.0 }
  0xa2   :  { %v151_v45 = vadd.f32 %v150_v36, %v149_v40  ;;  %v85_v36 = vld [vmem:[%s3576_s0 + $0xd1] sm:$0x1] }
  0xa3   :  { %v180_v41 = vsel %vm18_vm0, %v169_v31, 0.0  ;;  %v84_v31 = vld [vmem:[%s3576_s0 + $0xd0] sm:$0x1] }
  0xa4   :  { %v181_v48 = vadd.f32 %v180_v41, %v179_v44 }
  0xa8   :  { %v2430_v17 = vpop.f32.mrf.mxu0 }
  0xa9   :  { %v170_v37 = vmul.f32 %v2430_v17, %v2430_v17  ;;  %v152_v42 = vsel %vm18_vm0, %v2430_v17, 0.0 }
  0xaa   :  { %v153_v49 = vadd.f32 %v152_v42, %v151_v45 }
  0xab   :  { %v182_v46 = vsel %vm18_vm0, %v170_v37, 0.0 }
  0xac   :  { %v183_v52 = vadd.f32 %v182_v46, %v181_v48 }
  0xb0   :  { %v2451_v32 = vpop.f32.mrf.mxu0 }
  0xb1   :  { %v171_v43 = vmul.f32 %v2451_v32, %v2451_v32  ;;  %v154_v47 = vsel %vm18_vm0, %v2451_v32, 0.0 }
  0xb2   :  { %v155_v53 = vadd.f32 %v154_v47, %v153_v49 }
  0xb3   :  { %v184_v50 = vsel %vm18_vm0, %v171_v43, 0.0 }
  0xb4   :  { %v185_v57 = vadd.f32 %v184_v50, %v183_v52 }
  0xb8   :  { %v2468_v51 = vpop.f32.mrf.mxu0 }
  0xb9   :  { %v142_v54 = vsel %vm118_vm2, %v2468_v51, 0.0 }
  0xba   :  { %v156_v55 = vsel %vm18_vm0, %v142_v54, 0.0  ;;  %v172_v56 = vmul.f32 %v142_v54, %v142_v54 }
  0xbb   :  { %v157_v58 = vadd.f32 %v156_v55, %v155_v53 }
  0xbc   :  { %v186_v59 = vsel %vm18_vm0, %v172_v56, 0.0 }
  0xbd   :  { %v158_v60 = vrot.slane %v157_v58, 4  ;;  %v187_v61 = vadd.f32 %v186_v59, %v185_v57 }
  0xbf   :  { %v159_v62 = vadd.f32 %v158_v60, %v157_v58  ;;  %v188_v63 = vrot.slane %v187_v61, 4 }
  0xc1   :  { %v160_v0 = vrot.slane %v159_v62, 2  ;;  %v189_v1 = vadd.f32 %v188_v63, %v187_v61 }
  0xc3   :  { %v161_v2 = vadd.f32 %v160_v0, %v159_v62  ;;  %v190_v3 = vrot.slane %v189_v1, 2 }
  0xc5   :  { %v162_v4 = vrot.slane %v161_v2, 1  ;;  %v191_v5 = vadd.f32 %v190_v3, %v189_v1 }
  0xc7   :  { %v163_v6 = vadd.f32 %v162_v4, %v161_v2  ;;  %v192_v7 = vrot.slane %v191_v5, 1 }
  0xc9   :  { %v164_v8 = vmul.f32 0.017857144, %v163_v6  ;;  %v193_v13 = vadd.f32 %v192_v7, %v191_v5 }
  0xcb   :  { %v194_v16 = vmul.f32 0.017857144, %v193_v13  ;;  %v195_v18 = vmul.f32 %v164_v8, %v164_v8 }
  0xcd   :  { %v196_v19 = vsub.f32 %v194_v16, %v195_v18 }
  0xcf   :  { %v197_v23 = vadd.f32 1e-05, %v196_v19 }
  0xd1   :  { %2318 = vrsqrt.f32 %v197_v23  ;;  %vm204_vm4 = vweird.f32 %v197_v23 }
  0xd7   :  { %v2319_v26 = vpop.eup %2318 }
  0xd8   :  { %v199_v27 = vmul.f32 %v2319_v26, %v197_v23  ;;  %vm205_vm3 = vweird.f32 %v2319_v26 }
  0xd9   :  { %vm206_vm5 = vmor %vm204_vm4, %vm205_vm3  ;;  %vm1993_vm4 = vcmask 523264  }
  0xda   :  { %v200_v28 = vmul.f32 %v2319_v26, %v199_v27 }
  0xdc   :  { %v201_v29 = vmul.f32 0.5, %v200_v28 }
  0xde   :  { %v202_v30 = vsub.f32 1.5, %v201_v29 }
  0xe0   :  { %v203_v33 = vmul.f32 %v2319_v26, %v202_v30 }
  0xe2   :  { %v207_v34 = vsel %vm206_vm5, %v2319_v26, %v203_v33  ;;  %vm2017_vm5 = vcmask 424960  }
  0xe3   :  { %v208_v35 = vmul.f32 %v207_v34, %v84_v31 }
  0xe5   :  { %v209_v37 = vmul.f32 %v208_v35, %v164_v8  ;;  %v2494_v38 = vperm.slane %v208_v35, 0 }
  0xe7   :  { %v210_v39 = vsub.f32 %v85_v36, %v209_v37  ;;  %v212_v41 = vmul.f32 %v2494_v38, %v2417_v9  ;;  %v213_v42 = vmul.f32 %v2494_v38, %v2419_v10  ;;  %v214_v45 = vmul.f32 %v2494_v38, %v2421_v11 }
  0xe8   :  { %v215_v57 = vmul.f32 %v2494_v38, %v2423_v12  ;;  %v216_v1 = vmul.f32 %v2494_v38, %v2427_v15  ;;  %v217_v13 = vmul.f32 %v2494_v38, %v2430_v17  ;;  %v218_v24 = vmul.f32 %v2494_v38, %v2451_v32 }
  0xe9   :  { %v2496_v40 = vperm.slane %v210_v39, 0  ;;  %v219_v32 = vmul.f32 %v2494_v38, %v2468_v51 }
  0xeb   :  { %v221_v43 = vadd.f32 %v2496_v40, %v212_v41  ;;  %v222_v44 = vadd.f32 %v2496_v40, %v213_v42  ;;  %v223_v48 = vadd.f32 %v2496_v40, %v214_v45  ;;  %v224_v60 = vadd.f32 %v2496_v40, %v215_v57 }
  0xec   :  { %v225_v4 = vadd.f32 %v2496_v40, %v216_v1  ;;  %v226_v19 = vadd.f32 %v2496_v40, %v217_v13  ;;  %v227_v27 = vadd.f32 %v2496_v40, %v218_v24  ;;  %v228_v34 = vadd.f32 %v2496_v40, %v219_v32 }
  0xed   :  { %v2506_v46 = vmax.f32 %v221_v43, 0.0  ;;  %v2508_v47 = vmax.f32 %v222_v44, 0.0  ;;  %v2519_v55 = vmax.f32 %v223_v48, 0.0  ;;  %v2533_v0 = vmax.f32 %v224_v60, 0.0 }
  0xee   :  { %v2547_v8 = vmax.f32 %v225_v4, 0.0  ;;  %v2561_v23 = vmax.f32 %v226_v19, 0.0  ;;  %v235_v31 = vmax.f32 %v227_v27, 0.0  ;;  %v236_v39 = vmax.f32 %v228_v34, 0.0 }
  0xef   :  { %v248_v9 = vrot.slane %v2506_v46, 1  ;;  %v249_v10 = vrot.slane %v2508_v47, 1  ;;  %v318_v49 = vrot.slane %v2506_v46, 3  ;;  %v319_v50 = vrot.slane %v2508_v47, 3 }
  0xf0   :  { %v387_v52 = vrot.slane %v2506_v46, 4  ;;  %v388_v11 = vrot.slane %v2508_v47, 4  ;;  %v251_v58 = vrot.slane %v2519_v55, 1  ;;  %v321_v59 = vrot.slane %v2519_v55, 3 }
  0xf1   :  { %v250_v53 = vsel %vm247_vm6, %v248_v9, %v249_v10  ;;  %v320_v54 = vsel %vm317_vm7, %v318_v49, %v319_v50  ;;  %v390_v61 = vrot.slane %v2519_v55, 4  ;;  %v253_v2 = vrot.slane %v2533_v0, 1 }
  0xf2   :  { %2132 = vmatmul.msk.f32.vlgmr.msra.gmra.mxu1 %vm18_vm0, %v250_v53  ;;  %2139 = vmatmul.msk.f32.vlgmr.msra.gmra.mxu2 %vm18_vm0, %v320_v54  ;;  %v389_v56 = vsel %vm386_vm8, %v387_v52, %v388_v11  ;;  %v252_v62 = vsel %vm247_vm6, %v249_v10, %v251_v58  ;;  %v322_v63 = vsel %vm317_vm7, %v319_v50, %v321_v59  ;;  %v323_v3 = vrot.slane %v2533_v0, 3 }
  0xf3   :  { %2146 = vmatmul.msk.f32.vlgmr.msra.gmra.mxu3 %vm18_vm0, %v389_v56  ;;  %v391_v12 = vsel %vm386_vm8, %v388_v11, %v390_v61  ;;  %v392_v5 = vrot.slane %v2533_v0, 4  ;;  %v254_v6 = vsel %vm247_vm6, %v251_v58, %v253_v2  ;;  %v255_v16 = vrot.slane %v2547_v8, 1 }
  0xf4   :  { %v324_v7 = vsel %vm317_vm7, %v321_v59, %v323_v3  ;;  %v325_v18 = vrot.slane %v2547_v8, 3  ;;  %v394_v20 = vrot.slane %v2547_v8, 4  ;;  %v257_v25 = vrot.slane %v2561_v23, 1 }
  0xf5   :  { %v393_v15 = vsel %vm386_vm8, %v390_v61, %v392_v5  ;;  %v256_v21 = vsel %vm247_vm6, %v253_v2, %v255_v16  ;;  %v327_v26 = vrot.slane %v2561_v23, 3  ;;  %v396_v28 = vrot.slane %v2561_v23, 4 }
  0xf6   :  { %v326_v22 = vsel %vm317_vm7, %v323_v3, %v325_v18  ;;  %v395_v17 = vsel %vm386_vm8, %v392_v5, %v394_v20  ;;  %v258_v29 = vsel %vm247_vm6, %v255_v16, %v257_v25  ;;  %v259_v35 = vrot.slane %v235_v31, 1 }
  0xf7   :  { %v328_v30 = vsel %vm317_vm7, %v325_v18, %v327_v26  ;;  %v397_v33 = vsel %vm386_vm8, %v394_v20, %v396_v28  ;;  %v329_v36 = vrot.slane %v235_v31, 3  ;;  %v398_v37 = vrot.slane %v235_v31, 4 }
  0xf8   :  { %v260_v41 = vsel %vm247_vm6, %v257_v25, %v259_v35  ;;  %v261_v51 = vrot.slane %v236_v39, 1  ;;  %v331_v38 = vrot.slane %v236_v39, 3  ;;  %v400_v44 = vrot.slane %v236_v39, 4 }
  0xf9   :  { %v330_v42 = vsel %vm317_vm7, %v327_v26, %v329_v36  ;;  %v399_v43 = vsel %vm386_vm8, %v396_v28, %v398_v37  ;;  %v507_v9 = vrot.slane %v2506_v46, 2  ;;  %v508_v10 = vrot.slane %v2508_v47, 2 }
  0xfa   :  { %2133 = vmatmul.msk.f32.gmra.mxu1 %vm18_vm0, %v252_v62  ;;  %2140 = vmatmul.msk.f32.gmra.mxu2 %vm18_vm0, %v322_v63  ;;  %v262_v40 = vsel %vm247_vm6, %v259_v35, %v261_v51  ;;  %v332_v45 = vsel %vm317_vm7, %v329_v36, %v331_v38  ;;  %v401_v48 = vsel %vm386_vm8, %v398_v37, %v400_v44  ;;  %v510_v50 = vrot.slane %v2519_v55, 2 }
  0xfb   :  { %2147 = vmatmul.msk.f32.gmra.mxu3 %vm18_vm0, %v391_v12  ;;  %v509_v49 = vsel %vm506_vm9, %v507_v9, %v508_v10  ;;  %v512_v11 = vrot.slane %v2533_v0, 2  ;;  %v520_v58 = vrot.slane %v236_v39, 2 }
  0xfc   :  { %v511_v52 = vsel %vm506_vm9, %v508_v10, %v510_v50 }
  0xfd   :  { %v513_v53 = vsel %vm506_vm9, %v510_v50, %v512_v11 }
 0x102   :  { %2134 = vmatmul.msk.f32.gmra.mxu1 %vm18_vm0, %v254_v6  ;;  %2141 = vmatmul.msk.f32.gmra.mxu2 %vm18_vm0, %v324_v7 }
 0x103   :  { %2148 = vmatmul.msk.f32.gmra.mxu3 %vm18_vm0, %v393_v15 }
 0x10a   :  { %2135 = vmatmul.msk.f32.gmra.mxu1 %vm18_vm0, %v256_v21  ;;  %2142 = vmatmul.msk.f32.gmra.mxu2 %vm18_vm0, %v326_v22 }
 0x10b   :  { %2149 = vmatmul.msk.f32.gmra.mxu3 %vm18_vm0, %v395_v17 }
 0x112   :  { %2136 = vmatmul.msk.f32.gmra.mxu1 %vm18_vm0, %v258_v29  ;;  %2143 = vmatmul.msk.f32.gmra.mxu2 %vm18_vm0, %v328_v30 }
 0x113   :  { %2150 = vmatmul.msk.f32.gmra.mxu3 %vm18_vm0, %v397_v33 }
 0x11a   :  { %2137 = vmatmul.msk.f32.gmra.mxu1 %vm18_vm0, %v260_v41  ;;  %2144 = vmatmul.msk.f32.gmra.mxu2 %vm18_vm0, %v330_v42 }
 0x11b   :  { %2151 = vmatmul.msk.f32.gmra.mxu3 %vm18_vm0, %v399_v43 }
 0x122   :  { %2138 = vmatmul.msk.f32.gmra.mxu1 %vm18_vm0, %v262_v40  ;;  %2145 = vmatmul.msk.f32.gmra.mxu2 %vm18_vm0, %v332_v45 }
 0x123   :  { %2152 = vmatmul.msk.f32.gmra.mxu3 %vm18_vm0, %v401_v48 }
 0x12a   :  { %2153 = vmatmul.msk.f32.vlgmr.msrb.gmra.mxu1 %vm18_vm0, %v2506_v46  ;;  %2160 = vmatmul.msk.f32.vlgmr.msrb.gmra.mxu2 %vm18_vm0, %v509_v49  ;;  %v514_v46 = vrot.slane %v2547_v8, 2 }
 0x12c   :  { %v515_v54 = vsel %vm506_vm9, %v512_v11, %v514_v46 }
 0x132   :  { %2154 = vmatmul.msk.f32.gmra.mxu1 %vm18_vm0, %v2508_v47  ;;  %2161 = vmatmul.msk.f32.gmra.mxu2 %vm18_vm0, %v511_v52  ;;  %v516_v47 = vrot.slane %v2561_v23, 2 }
 0x134   :  { %v517_v56 = vsel %vm506_vm9, %v514_v46, %v516_v47 }
 0x13a   :  { %2155 = vmatmul.msk.f32.gmra.mxu1 %vm18_vm0, %v2519_v55  ;;  %2162 = vmatmul.msk.f32.gmra.mxu2 %vm18_vm0, %v513_v53  ;;  %v518_v55 = vrot.slane %v235_v31, 2 }
 0x13c   :  { %v519_v57 = vsel %vm506_vm9, %v516_v47, %v518_v55  ;;  %v521_v59 = vsel %vm506_vm9, %v518_v55, %v520_v58 }
 0x142   :  { %2156 = vmatmul.msk.f32.gmra.mxu1 %vm18_vm0, %v2533_v0  ;;  %2163 = vmatmul.msk.f32.gmra.mxu2 %vm18_vm0, %v515_v54 }
 0x14a   :  { %2157 = vmatmul.msk.f32.gmra.mxu1 %vm18_vm0, %v2547_v8  ;;  %2164 = vmatmul.msk.f32.gmra.mxu2 %vm18_vm0, %v517_v56 }
 0x152   :  { %2158 = vmatmul.msk.f32.gmra.mxu1 %vm18_vm0, %v2561_v23  ;;  %2165 = vmatmul.msk.f32.gmra.mxu2 %vm18_vm0, %v519_v57 }
 0x15a   :  { %2159 = vmatmul.msk.f32.gmra.mxu1 %vm18_vm0, %v235_v31  ;;  %2166 = vmatmul.msk.f32.gmra.mxu2 %vm18_vm0, %v521_v59  ;;  %vm1103_vm0 = vcmask 125952  }
 0x16f   :  { %v294_v60 = vpop.f32.mrf.mxu1 }
 0x175   :  { %v364_v61 = vpop.f32.mrf.mxu2 }
 0x176   :  { %v433_v8 = vpop.f32.mrf.mxu3 }
 0x177   :  { %v297_v62 = vpop.f32.mrf.mxu1 }
 0x17d   :  { %v367_v63 = vpop.f32.mrf.mxu2 }
 0x17e   :  { %v436_v20 = vpop.f32.mrf.mxu3 }
 0x17f   :  { %v300_v0 = vpop.f32.mrf.mxu1 }
 0x185   :  { %v370_v12 = vpop.f32.mrf.mxu2 }
 0x186   :  { %v439_v28 = vpop.f32.mrf.mxu3 }
 0x187   :  { %v303_v1 = vpop.f32.mrf.mxu1 }
 0x18d   :  { %v373_v2 = vpop.f32.mrf.mxu2 }
 0x18e   :  { %v442_v40 = vpop.f32.mrf.mxu3 }
 0x18f   :  { %v306_v3 = vpop.f32.mrf.mxu1 }
 0x195   :  { %v376_v4 = vpop.f32.mrf.mxu2 }
 0x196   :  { %v445_v54 = vpop.f32.mrf.mxu3 }
 0x197   :  { %v309_v5 = vpop.f32.mrf.mxu1 }
 0x19d   :  { %v379_v6 = vpop.f32.mrf.mxu2 }
 0x19f   :  { %v2627_v7 = vpop.f32.mrf.mxu1 }
 0x1a5   :  { %v2629_v15 = vpop.f32.mrf.mxu2 }
 0x1a7   :  { %v485_v13 = vpop.f32.mrf.mxu1 }
 0x1a8   :  { %v486_v18 = vadd.f32 %v485_v13, %v294_v60 }
 0x1ad   :  { %v553_v16 = vpop.f32.mrf.mxu2 }
 0x1ae   :  { %v554_v19 = vadd.f32 %v553_v16, %v364_v61 }
 0x1af   :  { %v488_v21 = vpop.f32.mrf.mxu1 }
 0x1b0   :  { %v574_v22 = vadd.f32 %v554_v19, %v486_v18  ;;  %v489_v24 = vadd.f32 %v488_v21, %v297_v62 }
 0x1b2   :  { %v2631_v17 = vadd.f32 %v574_v22, %v433_v8 }
 0x1b4   :  { %v646_v29 = vmul.f32 %v2631_v17, %v2631_v17  ;;  %v626_v31 = vsel %vm625_vm10, %v2631_v17, 0.0 }
 0x1b5   :  { %v556_v23 = vpop.f32.mrf.mxu2 }
 0x1b6   :  { %v557_v25 = vadd.f32 %v556_v23, %v367_v63  ;;  %v653_v36 = vsel %vm625_vm10, %v646_v29, 0.0 }
 0x1b7   :  { %v491_v26 = vpop.f32.mrf.mxu1 }
 0x1b8   :  { %v575_v27 = vadd.f32 %v557_v25, %v489_v24  ;;  %v492_v39 = vadd.f32 %v491_v26, %v300_v0 }
 0x1ba   :  { %v2635_v30 = vadd.f32 %v575_v27, %v436_v20 }
 0x1bc   :  { %v627_v33 = vsel %vm625_vm10, %v2635_v30, 0.0  ;;  %v647_v32 = vmul.f32 %v2635_v30, %v2635_v30 }
 0x1bd   :  { %v628_v34 = vadd.f32 %v627_v33, %v626_v31  ;;  %v559_v35 = vpop.f32.mrf.mxu2 }
 0x1be   :  { %v654_v37 = vsel %vm625_vm10, %v647_v32, 0.0  ;;  %v560_v41 = vadd.f32 %v559_v35, %v370_v12 }
 0x1bf   :  { %v655_v42 = vadd.f32 %v654_v37, %v653_v36  ;;  %v494_v43 = vpop.f32.mrf.mxu1 }
 0x1c0   :  { %v576_v51 = vadd.f32 %v560_v41, %v492_v39  ;;  %v495_v38 = vadd.f32 %v494_v43, %v303_v1 }
 0x1c2   :  { %v2645_v44 = vadd.f32 %v576_v51, %v439_v28 }
 0x1c4   :  { %v629_v45 = vsel %vm625_vm10, %v2645_v44, 0.0  ;;  %v648_v48 = vmul.f32 %v2645_v44, %v2645_v44 }
 0x1c5   :  { %v630_v9 = vadd.f32 %v629_v45, %v628_v34  ;;  %v562_v10 = vpop.f32.mrf.mxu2 }
 0x1c6   :  { %v656_v49 = vsel %vm625_vm10, %v648_v48, 0.0  ;;  %v563_v50 = vadd.f32 %v562_v10, %v373_v2  ;;  %v448_v2 = vpop.f32.mrf.mxu3  ;;  %v715_v48 = vld [vmem:[%s3576_s0 + $0x98] sm:$0xff]  ;;  %v713_v10 = vld [vmem:[%s3576_s0 + $0x88] sm:$0xff] }
 0x1c7   :  { %v657_v52 = vadd.f32 %v656_v49, %v655_v42  ;;  %v497_v11 = vpop.f32.mrf.mxu1  ;;  %764 = vmatpush.msrb.mxu3 %v715_v48  ;;  %952 = vmatpush.msra.mxu2 %v713_v10  ;;  %v712_v49 = vld [vmem:[%s3576_s0 + $0x80] sm:$0xff] }
 0x1c8   :  { %v577_v53 = vadd.f32 %v563_v50, %v495_v38  ;;  %v498_v56 = vadd.f32 %v497_v11, %v306_v3  ;;  %v791_v50 = vld [vmem:[%s3576_s0 + $0xb8] sm:$0xff] }
 0x1c9   :  { %833 = vmatpush.msrb.mxu0 %v791_v50  ;;  %953 = vmatpush.msra.mxu2 %v712_v49 }
 0x1ca   :  { %v2652_v46 = vadd.f32 %v577_v53, %v442_v40  ;;  %v790_v53 = vld [vmem:[%s3576_s0 + $0xb0] sm:$0xff] }
 0x1cb   :  { %834 = vmatpush.msrb.mxu0 %v790_v53 }
 0x1cd   :  { %v565_v47 = vpop.f32.mrf.mxu2 }
 0x1ce   :  { %v566_v55 = vadd.f32 %v565_v47, %v376_v4  ;;  %v789_v47 = vld [vmem:[%s3576_s0 + $0xa8] sm:$0xff] }
 0x1cf   :  { %v500_v58 = vpop.f32.mrf.mxu1 }
 0x1d0   :  { %v578_v57 = vadd.f32 %v566_v55, %v498_v56  ;;  %v501_v12 = vadd.f32 %v500_v58, %v309_v5  ;;  %v451_v5 = vpop.f32.mrf.mxu3 }
 0x1d2   :  { %v2654_v59 = vadd.f32 %v578_v57, %v445_v54  ;;  %v857_v54 = vld [vmem:[%s3576_s0 + $0xc0] sm:$0xff] }
 0x1d4   :  { %v633_v60 = vsel %vm625_vm10, %v2654_v59, 0.0  ;;  %v650_v61 = vmul.f32 %v2654_v59, %v2654_v59 }
 0x1d5   :  { %v634_v62 = vadd.f32 %v633_v60, %v630_v9  ;;  %v568_v63 = vpop.f32.mrf.mxu2  ;;  %v714_v9 = vld [vmem:[%s3576_s0 + $0x90] sm:$0xff] }
 0x1d6   :  { %v660_v0 = vsel %vm625_vm10, %v650_v61, 0.0  ;;  %v569_v1 = vadd.f32 %v568_v63, %v379_v6  ;;  %765 = vmatpush.msrb.mxu3 %v714_v9  ;;  %v588_v61 = vld [vmem:[%s3576_s0 + $0xd2] sm:$0x1] }
 0x1d7   :  { %v661_v8 = vadd.f32 %v660_v0, %v657_v52  ;;  %v503_v13 = vpop.f32.mrf.mxu1  ;;  %v858_v52 = vld [vmem:[%s3576_s0 + $0xc8] sm:$0xff] }
 0x1d8   :  { %v579_v3 = vadd.f32 %v569_v1, %v501_v12  ;;  %v504_v19 = vadd.f32 %v503_v13, %v2627_v7  ;;  %900 = vmatpush.msra.mxu1 %v858_v52  ;;  %1017 = vmatpush.msra.mxu3 %v789_v47  ;;  %v589_v12 = vld [vmem:[%s3576_s0 + $0xd3] sm:$0x1] }
 0x1da   :  { %v2661_v4 = vadd.f32 %v579_v3, %v448_v2  ;;  %901 = vmatpush.msra.mxu1 %v857_v54 }
 0x1dc   :  { %v651_v18 = vmul.f32 %v2661_v4, %v2661_v4  ;;  %v635_v21 = vsel %vm625_vm10, %v2661_v4, 0.0 }
 0x1dd   :  { %v571_v16 = vpop.f32.mrf.mxu2  ;;  %v636_v24 = vadd.f32 %v635_v21, %v634_v62 }
 0x1de   :  { %v572_v20 = vadd.f32 %v571_v16, %v2629_v15  ;;  %v662_v6 = vsel %vm625_vm10, %v651_v18, 0.0 }
 0x1df   :  { %v663_v27 = vadd.f32 %v662_v6, %v661_v8 }
 0x1e0   :  { %v580_v22 = vadd.f32 %v572_v20, %v504_v19 }
 0x1e2   :  { %v587_v23 = vadd.f32 %v580_v22, %v451_v5 }
 0x1e4   :  { %v637_v25 = vsel %vm625_vm10, %v587_v23, 0.0  ;;  %v652_v26 = vmul.f32 %v587_v23, %v587_v23 }
 0x1e5   :  { %v638_v28 = vadd.f32 %v637_v25, %v636_v24 }
 0x1e6   :  { %v664_v29 = vsel %vm625_vm10, %v652_v26, 0.0 }
 0x1e7   :  { %v639_v31 = vrot.slane %v638_v28, 4  ;;  %v665_v7 = vadd.f32 %v664_v29, %v663_v27 }
 0x1e9   :  { %v640_v33 = vadd.f32 %v639_v31, %v638_v28  ;;  %v666_v15 = vrot.slane %v665_v7, 4 }
 0x1eb   :  { %v641_v32 = vrot.slane %v640_v33, 2  ;;  %v667_v34 = vadd.f32 %v666_v15, %v665_v7 }
 0x1ed   :  { %v642_v35 = vadd.f32 %v641_v32, %v640_v33  ;;  %v668_v36 = vrot.slane %v667_v34, 2 }
 0x1ef   :  { %v643_v37 = vrot.slane %v642_v35, 1  ;;  %v669_v39 = vadd.f32 %v668_v36, %v667_v34 }
 0x1f1   :  { %v644_v41 = vadd.f32 %v643_v37, %v642_v35  ;;  %v670_v42 = vrot.slane %v669_v39, 1 }
 0x1f3   :  { %v645_v43 = vmul.f32 0.020833334, %v644_v41  ;;  %v671_v51 = vadd.f32 %v670_v42, %v669_v39 }
 0x1f5   :  { %v672_v38 = vmul.f32 0.020833334, %v671_v51  ;;  %v673_v40 = vmul.f32 %v645_v43, %v645_v43 }
 0x1f7   :  { %v674_v45 = vsub.f32 %v672_v38, %v673_v40 }
 0x1f9   :  { %v675_v11 = vadd.f32 1e-05, %v674_v45 }
 0x1fb   :  { %2320 = vrsqrt.f32 %v675_v11  ;;  %vm682_vm12 = vweird.f32 %v675_v11 }
 0x201   :  { %v2321_v56 = vpop.eup %2320 }
 0x202   :  { %v677_v55 = vmul.f32 %v2321_v56, %v675_v11  ;;  %vm683_vm11 = vweird.f32 %v2321_v56 }
 0x203   :  { %vm684_vm13 = vmor %vm682_vm12, %vm683_vm11 }
 0x204   :  { %v678_v57 = vmul.f32 %v2321_v56, %v677_v55 }
 0x206   :  { %v679_v58 = vmul.f32 0.5, %v678_v57 }
 0x208   :  { %v680_v60 = vsub.f32 1.5, %v679_v58 }
 0x20a   :  { %v681_v62 = vmul.f32 %v2321_v56, %v680_v60 }
 0x20c   :  { %v685_v63 = vsel %vm684_vm13, %v2321_v56, %v681_v62 }
 0x20d   :  { %v686_v0 = vmul.f32 %v685_v63, %v588_v61 }
 0x20f   :  { %v687_v1 = vmul.f32 %v686_v0, %v645_v43  ;;  %v689_v2 = vperm.slane %v686_v0, 0 }
 0x211   :  { %v688_v8 = vsub.f32 %v589_v12, %v687_v1  ;;  %v696_v3 = vmul.f32 %v689_v2, %v587_v23  ;;  %v690_v13 = vmul.f32 %v689_v2, %v2631_v17  ;;  %v691_v16 = vmul.f32 %v689_v2, %v2635_v30  ;;  %v788_v23 = vld [vmem:[%s3576_s0 + $0xa0] sm:$0xff] }
 0x212   :  { %v692_v18 = vmul.f32 %v689_v2, %v2645_v44  ;;  %v693_v19 = vmul.f32 %v689_v2, %v2652_v46  ;;  %v694_v20 = vmul.f32 %v689_v2, %v2654_v59  ;;  %v695_v21 = vmul.f32 %v689_v2, %v2661_v4  ;;  %1018 = vmatpush.msra.mxu3 %v788_v23 }
 0x213   :  { %v697_v22 = vperm.slane %v688_v8, 0 }
 0x215   :  { %v704_v5 = vadd.f32 %v697_v22, %v696_v3  ;;  %v698_v6 = vadd.f32 %v697_v22, %v690_v13  ;;  %v699_v24 = vadd.f32 %v697_v22, %v691_v16  ;;  %v700_v25 = vadd.f32 %v697_v22, %v692_v18 }
 0x216   :  { %v701_v17 = vadd.f32 %v697_v22, %v693_v19  ;;  %v702_v26 = vadd.f32 %v697_v22, %v694_v20  ;;  %v703_v30 = vadd.f32 %v697_v22, %v695_v21 }
 0x217   :  { %v705_v44 = vmax.f32 %v698_v6, 0.0  ;;  %v706_v27 = vmax.f32 %v699_v24, 0.0  ;;  %v2714_v46 = vmax.f32 %v700_v25, 0.0  ;;  %v2716_v59 = vmax.f32 %v704_v5, 0.0 }
 0x218   :  { %v2718_v4 = vmax.f32 %v701_v17, 0.0  ;;  %v2720_v28 = vmax.f32 %v702_v26, 0.0  ;;  %v2722_v29 = vmax.f32 %v703_v30, 0.0 }
 0x219   :  { %2188 = vmatmul.msk.f32.vlgmr.msra.gmra.mxu2 %vm625_vm10, %v705_v44  ;;  %v723_v31 = vrot.slane %v705_v44, 1  ;;  %v724_v7 = vrot.slane %v706_v27, 1  ;;  %v792_v33 = vrot.slane %v705_v44, 3  ;;  %v793_v15 = vrot.slane %v706_v27, 3 }
 0x21a   :  { %v859_v32 = vrot.slane %v705_v44, 4  ;;  %v860_v34 = vrot.slane %v706_v27, 4  ;;  %v726_v35 = vrot.slane %v2714_v46, 1  ;;  %v795_v36 = vrot.slane %v2714_v46, 3 }
 0x21b   :  { %v725_v37 = vsel %vm247_vm6, %v723_v31, %v724_v7  ;;  %v794_v39 = vsel %vm317_vm7, %v792_v33, %v793_v15  ;;  %v862_v41 = vrot.slane %v2714_v46, 4  ;;  %v728_v42 = vrot.slane %v2718_v4, 1 }
 0x21c   :  { %2167 = vmatmul.msk.f32.vlgmr.msrb.gmra.mxu3 %vm625_vm10, %v725_v37  ;;  %2174 = vmatmul.msk.f32.vlgmr.msrb.gmra.mxu0 %vm625_vm10, %v794_v39  ;;  %v861_v43 = vsel %vm386_vm8, %v859_v32, %v860_v34  ;;  %v727_v51 = vsel %vm247_vm6, %v724_v7, %v726_v35  ;;  %v796_v38 = vsel %vm317_vm7, %v793_v15, %v795_v36  ;;  %v797_v40 = vrot.slane %v2718_v4, 3 }
 0x21d   :  { %2181 = vmatmul.msk.f32.vlgmr.msra.gmra.mxu1 %vm625_vm10, %v861_v43  ;;  %v863_v45 = vsel %vm386_vm8, %v860_v34, %v862_v41  ;;  %v729_v48 = vsel %vm247_vm6, %v726_v35, %v728_v42  ;;  %v864_v9 = vrot.slane %v2718_v4, 4  ;;  %v730_v10 = vrot.slane %v2720_v28, 1 }
 0x21e   :  { %v798_v49 = vsel %vm317_vm7, %v795_v36, %v797_v40  ;;  %v799_v50 = vrot.slane %v2720_v28, 3  ;;  %v866_v52 = vrot.slane %v2720_v28, 4  ;;  %v732_v11 = vrot.slane %v2722_v29, 1 }
 0x21f   :  { %v865_v53 = vsel %vm386_vm8, %v862_v41, %v864_v9  ;;  %v731_v54 = vsel %vm247_vm6, %v728_v42, %v730_v10  ;;  %v801_v47 = vrot.slane %v2722_v29, 3  ;;  %v868_v56 = vrot.slane %v2722_v29, 4 }
 0x220   :  { %v800_v55 = vsel %vm317_vm7, %v797_v40, %v799_v50  ;;  %v867_v57 = vsel %vm386_vm8, %v864_v9, %v866_v52  ;;  %v733_v58 = vsel %vm247_vm6, %v730_v10, %v732_v11  ;;  %v734_v60 = vrot.slane %v2716_v59, 1 }
 0x221   :  { %2189 = vmatmul.msk.f32.gmra.mxu2 %vm625_vm10, %v706_v27  ;;  %v802_v61 = vsel %vm317_vm7, %v799_v50, %v801_v47  ;;  %v869_v62 = vsel %vm386_vm8, %v866_v52, %v868_v56  ;;  %v803_v63 = vrot.slane %v2716_v59, 3  ;;  %v870_v0 = vrot.slane %v2716_v59, 4 }
 0x222   :  { %v735_v12 = vsel %vm247_vm6, %v732_v11, %v734_v60  ;;  %v976_v1 = vrot.slane %v705_v44, 2  ;;  %v977_v2 = vrot.slane %v706_v27, 2  ;;  %v979_v8 = vrot.slane %v2714_v46, 2 }
 0x223   :  { %v804_v3 = vsel %vm317_vm7, %v801_v47, %v803_v63  ;;  %v871_v13 = vsel %vm386_vm8, %v868_v56, %v870_v0  ;;  %v981_v16 = vrot.slane %v2718_v4, 2  ;;  %v983_v18 = vrot.slane %v2720_v28, 2 }
 0x224   :  { %2168 = vmatmul.msk.f32.gmra.mxu3 %vm625_vm10, %v727_v51  ;;  %2175 = vmatmul.msk.f32.gmra.mxu0 %vm625_vm10, %v796_v38  ;;  %v978_v19 = vsel %vm506_vm9, %v976_v1, %v977_v2  ;;  %v980_v20 = vsel %vm506_vm9, %v977_v2, %v979_v8  ;;  %v985_v21 = vrot.slane %v2722_v29, 2  ;;  %v987_v22 = vrot.slane %v2716_v59, 2 }
 0x225   :  { %2182 = vmatmul.msk.f32.gmra.mxu1 %vm625_vm10, %v863_v45  ;;  %v982_v5 = vsel %vm506_vm9, %v979_v8, %v981_v16  ;;  %v984_v6 = vsel %vm506_vm9, %v981_v16, %v983_v18  ;;  %v89_v52 = vadd.s32 16, %v2425_v14  ;;  %vm2081_vm6 = vcmask 17408  }
 0x226   :  { %v986_v24 = vsel %vm506_vm9, %v983_v18, %v985_v21  ;;  %v988_v25 = vsel %vm506_vm9, %v985_v21, %v987_v22 }
 0x227   :  { %vm1059_vm14 = vcmp.lt.s32.totalorder %v89_v52, 20 }
 0x229   :  { %2190 = vmatmul.msk.f32.gmra.mxu2 %vm625_vm10, %v2714_v46 }
 0x22c   :  { %2169 = vmatmul.msk.f32.gmra.mxu3 %vm625_vm10, %v729_v48  ;;  %2176 = vmatmul.msk.f32.gmra.mxu0 %vm625_vm10, %v798_v49 }
 0x22d   :  { %2183 = vmatmul.msk.f32.gmra.mxu1 %vm625_vm10, %v865_v53 }
 0x231   :  { %2191 = vmatmul.msk.f32.gmra.mxu2 %vm625_vm10, %v2718_v4 }
 0x234   :  { %2170 = vmatmul.msk.f32.gmra.mxu3 %vm625_vm10, %v731_v54  ;;  %2177 = vmatmul.msk.f32.gmra.mxu0 %vm625_vm10, %v800_v55 }
 0x235   :  { %2184 = vmatmul.msk.f32.gmra.mxu1 %vm625_vm10, %v867_v57 }
 0x239   :  { %2192 = vmatmul.msk.f32.gmra.mxu2 %vm625_vm10, %v2720_v28 }
 0x23c   :  { %2171 = vmatmul.msk.f32.gmra.mxu3 %vm625_vm10, %v733_v58  ;;  %2178 = vmatmul.msk.f32.gmra.mxu0 %vm625_vm10, %v802_v61 }
 0x23d   :  { %2185 = vmatmul.msk.f32.gmra.mxu1 %vm625_vm10, %v869_v62 }
 0x241   :  { %2193 = vmatmul.msk.f32.gmra.mxu2 %vm625_vm10, %v2722_v29 }
 0x244   :  { %2172 = vmatmul.msk.f32.gmra.mxu3 %vm625_vm10, %v735_v12  ;;  %2179 = vmatmul.msk.f32.gmra.mxu0 %vm625_vm10, %v804_v3 }
 0x245   :  { %2186 = vmatmul.msk.f32.gmra.mxu1 %vm625_vm10, %v871_v13 }
 0x249   :  { %2194 = vmatmul.msk.f32.gmra.mxu2 %vm625_vm10, %v2716_v59 }
 0x24c   :  { %2173 = vmatmul.msk.f32.gmra.mxu3 %vm625_vm10, %v734_v60  ;;  %2180 = vmatmul.msk.f32.gmra.mxu0 %vm625_vm10, %v803_v63 }
 0x24d   :  { %2187 = vmatmul.msk.f32.gmra.mxu1 %vm625_vm10, %v870_v0 }
 0x254   :  { %2195 = vmatmul.msk.f32.vlgmr.msra.gmra.mxu3 %vm625_vm10, %v978_v19 }
 0x25c   :  { %2196 = vmatmul.msk.f32.gmra.mxu3 %vm625_vm10, %v980_v20 }
 0x264   :  { %2197 = vmatmul.msk.f32.gmra.mxu3 %vm625_vm10, %v982_v5 }
 0x26c   :  { %2198 = vmatmul.msk.f32.gmra.mxu3 %vm625_vm10, %v984_v6 }
 0x274   :  { %2199 = vmatmul.msk.f32.gmra.mxu3 %vm625_vm10, %v986_v24 }
 0x27c   :  { %2200 = vmatmul.msk.f32.gmra.mxu3 %vm625_vm10, %v988_v25 }
 0x284   :  { %2201 = vmatmul.msk.f32.gmra.mxu3 %vm625_vm10, %v987_v22 }
 0x299   :  { %v836_v31 = vpop.f32.mrf.mxu0 }
 0x29a   :  { %v903_v7 = vpop.f32.mrf.mxu1 }
 0x29c   :  { %v955_v23 = vpop.f32.mrf.mxu2 }
 0x29f   :  { %v767_v17 = vpop.f32.mrf.mxu3 }
 0x2a0   :  { %v956_v36 = vadd.f32 %v955_v23, %v767_v17 }
 0x2a1   :  { %v839_v15 = vpop.f32.mrf.mxu0 }
 0x2a2   :  { %v906_v35 = vpop.f32.mrf.mxu1 }
 0x2a4   :  { %v958_v26 = vpop.f32.mrf.mxu2 }
 0x2a7   :  { %v770_v30 = vpop.f32.mrf.mxu3 }
 0x2a8   :  { %v959_v42 = vadd.f32 %v958_v26, %v770_v30 }
 0x2a9   :  { %v842_v39 = vpop.f32.mrf.mxu0 }
 0x2aa   :  { %v909_v40 = vpop.f32.mrf.mxu1 }
 0x2ac   :  { %v961_v44 = vpop.f32.mrf.mxu2 }
 0x2af   :  { %v773_v27 = vpop.f32.mrf.mxu3 }
 0x2b0   :  { %v962_v53 = vadd.f32 %v961_v44, %v773_v27 }
 0x2b1   :  { %v845_v54 = vpop.f32.mrf.mxu0 }
 0x2b2   :  { %v912_v61 = vpop.f32.mrf.mxu1 }
 0x2b4   :  { %v964_v46 = vpop.f32.mrf.mxu2 }
 0x2b7   :  { %v776_v59 = vpop.f32.mrf.mxu3 }
 0x2b8   :  { %v965_v4 = vadd.f32 %v964_v46, %v776_v59 }
 0x2b9   :  { %v848_v3 = vpop.f32.mrf.mxu0 }
 0x2ba   :  { %v915_v20 = vpop.f32.mrf.mxu1 }
 0x2bc   :  { %v967_v18 = vpop.f32.mrf.mxu2 }
 0x2bf   :  { %v779_v28 = vpop.f32.mrf.mxu3 }
 0x2c0   :  { %v968_v22 = vadd.f32 %v967_v18, %v779_v28 }
 0x2c1   :  { %v851_v24 = vpop.f32.mrf.mxu0 }
 0x2c4   :  { %v970_v23 = vpop.f32.mrf.mxu2 }
 0x2c7   :  { %v782_v29 = vpop.f32.mrf.mxu3 }
 0x2c8   :  { %v971_v27 = vadd.f32 %v970_v23, %v782_v29 }
 0x2cf   :  { %v2808_v33 = vpop.f32.mrf.mxu3 }
 0x2d7   :  { %v1020_v32 = vpop.f32.mrf.mxu3 }
 0x2d8   :  { %v1021_v34 = vadd.f32 %v1020_v32, %v836_v31  ;;  %v973_v32 = vpop.f32.mrf.mxu2 }
 0x2da   :  { %v1041_v37 = vadd.f32 %v1021_v34, %v956_v36  ;;  %v93_v34 = vadd.s32 48, %v2425_v14  ;;  %v974_v36 = vadd.f32 %v973_v32, %v2808_v33 }
 0x2dc   :  { %v2810_v43 = vadd.f32 %v1041_v37, %v903_v7  ;;  %vm1070_vm15 = vcmp.lt.s32.totalorder %v93_v34, 52 }
 0x2de   :  { %v1113_v45 = vmul.f32 %v2810_v43, %v2810_v43  ;;  %v1092_v9 = vsel %vm625_vm10, %v2810_v43, 0.0 }
 0x2df   :  { %v1023_v41 = vpop.f32.mrf.mxu3 }
 0x2e0   :  { %v1024_v51 = vadd.f32 %v1023_v41, %v839_v15  ;;  %v1120_v47 = vsel %vm625_vm10, %v1113_v45, 0.0  ;;  %v854_v15 = vpop.f32.mrf.mxu0 }
 0x2e2   :  { %v1042_v38 = vadd.f32 %v1024_v51, %v959_v42 }
 0x2e4   :  { %v2814_v48 = vadd.f32 %v1042_v38, %v906_v35 }
 0x2e6   :  { %v1093_v10 = vsel %vm625_vm10, %v2814_v48, 0.0  ;;  %v1114_v49 = vmul.f32 %v2814_v48, %v2814_v48 }
 0x2e7   :  { %v1094_v50 = vadd.f32 %v1093_v10, %v1092_v9  ;;  %v1026_v11 = vpop.f32.mrf.mxu3 }
 0x2e8   :  { %v1121_v56 = vsel %vm625_vm10, %v1114_v49, 0.0  ;;  %v1027_v55 = vadd.f32 %v1026_v11, %v842_v39 }
 0x2e9   :  { %v1122_v57 = vadd.f32 %v1121_v56, %v1120_v47 }
 0x2ea   :  { %v1043_v58 = vadd.f32 %v1027_v55, %v962_v53 }
 0x2ec   :  { %v2825_v60 = vadd.f32 %v1043_v58, %v909_v40 }
 0x2ee   :  { %v1087_v62 = vsel %vm1059_vm14, %v2825_v60, 0.0 }
 0x2ef   :  { %v1095_v63 = vsel %vm625_vm10, %v1087_v62, 0.0  ;;  %v1115_v0 = vmul.f32 %v1087_v62, %v1087_v62  ;;  %v1029_v12 = vpop.f32.mrf.mxu3 }
 0x2f0   :  { %v1096_v1 = vadd.f32 %v1095_v63, %v1094_v50  ;;  %v1030_v2 = vadd.f32 %v1029_v12, %v845_v54 }
 0x2f1   :  { %v1123_v8 = vsel %vm625_vm10, %v1115_v0, 0.0 }
 0x2f2   :  { %v1124_v13 = vadd.f32 %v1123_v8, %v1122_v57  ;;  %v1044_v16 = vadd.f32 %v1030_v2, %v965_v4  ;;  %v918_v4 = vpop.f32.mrf.mxu1  ;;  %v1964_v8 = vld [vmem:[%s3576_s0 + $0x48] sm:$0x3] }
 0x2f4   :  { %v2830_v19 = vadd.f32 %v1044_v16, %v912_v61  ;;  %v2355_v16 = vmov 0  }
 0x2f5   :  { %2224 = vset.pattern.permute.xlu2 %v2355_v16  ;;  %2226 = vset.pattern.permute.xlu0 %v2355_v16 }
 0x2f6   :  { %1969 = vperm.xlu2 %2224, %v1964_v8  }
 0x2f7   :  { %v1032_v21 = vpop.f32.mrf.mxu3 }
 0x2f8   :  { %v1033_v5 = vadd.f32 %v1032_v21, %v848_v3 }
 0x2fa   :  { %v1045_v6 = vadd.f32 %v1033_v5, %v968_v22  ;;  %v921_v41 = vpop.f32.mrf.mxu1 }
 0x2fc   :  { %v2832_v25 = vadd.f32 %v1045_v6, %v915_v20  ;;  %v1055_v6 = vld [vmem:[%s3576_s0 + $0xd4] sm:$0x1] }
 0x2fe   :  { %v1099_v17 = vsel %vm625_vm10, %v2832_v25, 0.0  ;;  %v1117_v26 = vmul.f32 %v2832_v25, %v2832_v25 }
 0x2ff   :  { %v1100_v30 = vadd.f32 %v1099_v17, %v1096_v1  ;;  %v1035_v44 = vpop.f32.mrf.mxu3 }
 0x300   :  { %v1127_v46 = vsel %vm625_vm10, %v1117_v26, 0.0  ;;  %v1036_v59 = vadd.f32 %v1035_v44, %v851_v24  ;;  %v1056_v26 = vld [vmem:[%s3576_s0 + $0xd5] sm:$0x1] }
 0x301   :  { %v1128_v28 = vadd.f32 %v1127_v46, %v1124_v13  ;;  %v2354_v13 = vmov 1  }
 0x302   :  { %v1046_v31 = vadd.f32 %v1036_v59, %v971_v27  ;;  %2225 = vset.pattern.permute.xlu1 %v2354_v13 }
 0x303   :  { %1975 = vperm.xlu1 %2225, %v1964_v8   ;;  %v2361_v8 = vmov 9  }
 0x304   :  { %v2839_v7 = vadd.f32 %v1046_v31, %v918_v4 }
 0x306   :  { %v1118_v39 = vmul.f32 %v2839_v7, %v2839_v7  ;;  %v1101_v42 = vsel %vm625_vm10, %v2839_v7, 0.0 }
 0x307   :  { %v1038_v35 = vpop.f32.mrf.mxu3  ;;  %v1102_v40 = vadd.f32 %v1101_v42, %v1100_v30 }
 0x308   :  { %v1039_v37 = vadd.f32 %v1038_v35, %v854_v15  ;;  %v1129_v38 = vsel %vm625_vm10, %v1118_v39, 0.0 }
 0x309   :  { %v1130_v10 = vadd.f32 %v1129_v38, %v1128_v28  ;;  %v2356_v38 = vmov 2  }
 0x30a   :  { %v1047_v29 = vadd.f32 %v1039_v37, %v974_v36 }
 0x30b   :  { %2227 = vset.pattern.permute.xlu1 %v2355_v16  ;;  %v2362_v16 = vmov 14  }
 0x30c   :  { %v1054_v51 = vadd.f32 %v1047_v29, %v921_v41 }
 0x30e   :  { %v1091_v45 = vsel %vm1070_vm15, %v1054_v51, 0.0 }
 0x30f   :  { %v1104_v14 = vsel %vm1103_vm0, %v1091_v45, 0.0  ;;  %v1119_v9 = vmul.f32 %v1091_v45, %v1091_v45  ;;  %v2358_v45 = vmov 4  }
 0x310   :  { %v1105_v33 = vadd.f32 %v1104_v14, %v1102_v40  ;;  %v2357_v40 = vmov 3   ;;  %v1992_v14 = vld [vmem:[%s3576_s0 + $0x120] sm:$0xff] }
 0x311   :  { %v1131_v49 = vsel %vm1103_vm0, %v1119_v9, 0.0  ;;  %2005 = vmatpush.msra.mxu0 %v1992_v14  ;;  %v1991_v9 = vld [vmem:[%s3576_s0 + $0x118] sm:$0xff] }
 0x312   :  { %v1106_v50 = vrot.slane %v1105_v33, 4  ;;  %v1132_v52 = vadd.f32 %v1131_v49, %v1130_v10  ;;  %v1990_v10 = vld [vmem:[%s3576_s0 + $0x110] sm:$0xff]  ;;  %v1988_v49 = vld [vmem:[%s3576_s0 + $0x100] sm:$0xff]  ;;  %v1231_v14 = vld [vmem:[%s3576_s0 + $0x1b8] sm:$0xff] }
 0x313   :  { %2006 = vmatpush.msra.mxu0 %v1991_v9  ;;  %v1230_v9 = vld [vmem:[%s3576_s0 + $0x1b0] sm:$0xff] }
 0x314   :  { %v1107_v11 = vadd.f32 %v1106_v50, %v1105_v33  ;;  %v1133_v53 = vrot.slane %v1132_v52, 4  ;;  %v1989_v33 = vld [vmem:[%s3576_s0 + $0x108] sm:$0xff]  ;;  %v2359_v50 = vmov 5  }
 0x315   :  { %2007 = vmatpush.msra.mxu0 %v1990_v10 }
 0x316   :  { %v1108_v54 = vrot.slane %v1107_v11, 2  ;;  %v1134_v47 = vadd.f32 %v1133_v53, %v1132_v52  ;;  %v1987_v52 = vld [vmem:[%s3576_s0 + $0xf8] sm:$0xff]  ;;  %v1986_v53 = vld [vmem:[%s3576_s0 + $0xf0] sm:$0xff] }
 0x317   :  { %2008 = vmatpush.msra.mxu0 %v1989_v33 }
 0x318   :  { %v1109_v56 = vadd.f32 %v1108_v54, %v1107_v11  ;;  %v1135_v55 = vrot.slane %v1134_v47, 2  ;;  %v2313_v11 = vld [vmem:[%s3576_s0 + $0xe0] ss:$0 sm:$0xff]  ;;  %v2314_v54 = vld [vmem:[%s3576_s0 + $0xe1] ss:$0 sm:$0xff] }
 0x319   :  { %2009 = vmatpush.msra.mxu0 %v1988_v49 }
 0x31a   :  { %v1110_v57 = vrot.slane %v1109_v56, 1  ;;  %v1136_v58 = vadd.f32 %v1135_v55, %v1134_v47 }
 0x31b   :  { %2010 = vmatpush.msra.mxu0 %v1987_v52 }
 0x31c   :  { %v1111_v61 = vadd.f32 %v1110_v57, %v1109_v56  ;;  %v1137_v62 = vrot.slane %v1136_v58, 1  ;;  %v1985_v56 = vld [vmem:[%s3576_s0 + $0xe8] sm:$0xff] }
 0x31d   :  { %2011 = vmatpush.msra.mxu0 %v1986_v53 }
 0x31e   :  { %v1112_v63 = vmul.f32 0.025, %v1111_v61  ;;  %v1138_v0 = vadd.f32 %v1137_v62, %v1136_v58  ;;  %v2315_v58 = vld [vmem:[%s3576_s0 + $0xd6] ss:$0 sm:$0xff] }
 0x31f   :  { %2012 = vmatpush.msra.mxu0 %v1985_v56  ;;  %v2363_v56 = vmov 7  }
 0x320   :  { %v1139_v12 = vmul.f32 0.025, %v1138_v0  ;;  %v1140_v1 = vmul.f32 %v1112_v63, %v1112_v63 }
 0x322   :  { %v1141_v2 = vsub.f32 %v1139_v12, %v1140_v1  ;;  %v2360_v1 = vmov 6  }
 0x324   :  { %v1142_v3 = vadd.f32 1e-05, %v1141_v2 }
 0x326   :  { %2322 = vrsqrt.f32 %v1142_v3  ;;  %vm1149_vm2 = vweird.f32 %v1142_v3 }
 0x32c   :  { %v2323_v18 = vpop.eup %2322 }
 0x32d   :  { %v1144_v20 = vmul.f32 %v2323_v18, %v1142_v3  ;;  %vm1150_vm1 = vweird.f32 %v2323_v18 }
 0x32e   :  { %vm1151_vm3 = vmor %vm1149_vm2, %vm1150_vm1 }
 0x32f   :  { %v1145_v21 = vmul.f32 %v2323_v18, %v1144_v20 }
 0x331   :  { %v1146_v22 = vmul.f32 0.5, %v1145_v21 }
 0x333   :  { %v1147_v5 = vsub.f32 1.5, %v1146_v22  ;;  %v1232_v22 = vld [vmem:[%s3576_s0 + $0x1c0] sm:$0xff] }
 0x335   :  { %v1148_v24 = vmul.f32 %v2323_v18, %v1147_v5 }
 0x337   :  { %v1152_v23 = vsel %vm1151_vm3, %v2323_v18, %v1148_v24  ;;  %v1183_v18 = vld [vmem:[%s3576_s0 + $0x188] sm:$0xff] }
 0x338   :  { %v1153_v17 = vmul.f32 %v1152_v23, %v1055_v6 }
 0x33a   :  { %v1154_v30 = vmul.f32 %v1153_v17, %v1112_v63  ;;  %v1156_v44 = vperm.slane %v1153_v17, 0  ;;  %v1229_v17 = vld [vmem:[%s3576_s0 + $0x1a8] sm:$0xff] }
 0x33c   :  { %v1155_v27 = vsub.f32 %v1056_v26, %v1154_v30  ;;  %v1157_v46 = vmul.f32 %v1156_v44, %v2810_v43  ;;  %v1158_v59 = vmul.f32 %v1156_v44, %v2814_v48  ;;  %v1159_v4 = vmul.f32 %v1156_v44, %v2825_v60  ;;  %v1180_v26 = vld [vmem:[%s3576_s0 + $0x170] sm:$0xff] }
 0x33d   :  { %v1160_v28 = vmul.f32 %v1156_v44, %v2830_v19  ;;  %v1161_v31 = vmul.f32 %v1156_v44, %v2832_v25  ;;  %v1163_v15 = vmul.f32 %v1156_v44, %v1054_v51  ;;  %v1162_v34 = vmul.f32 %v1156_v44, %v2839_v7 }
 0x33e   :  { %v1164_v32 = vperm.slane %v1155_v27, 0 }
 0x340   :  { %v1165_v35 = vadd.f32 %v1164_v32, %v1157_v46  ;;  %v1166_v36 = vadd.f32 %v1164_v32, %v1158_v59  ;;  %v1167_v37 = vadd.f32 %v1164_v32, %v1159_v4  ;;  %v1168_v39 = vadd.f32 %v1164_v32, %v1160_v28  ;;  %v1234_v28 = vld [vmem:[%s3576_s0 + $0x1d0] sm:$0xf] }
 0x341   :  { %v1169_v29 = vadd.f32 %v1164_v32, %v1161_v31  ;;  %v1170_v41 = vadd.f32 %v1164_v32, %v1162_v34  ;;  %v1171_v42 = vadd.f32 %v1164_v32, %v1163_v15  ;;  %v1185_v31 = vld [vmem:[%s3576_s0 + $0x198] sm:$0xf]  ;;  %v1179_v15 = vld [vmem:[%s3576_s0 + $0x168] sm:$0xff]  ;;  %v1228_v32 = vld [vmem:[%s3576_s0 + $0x1a0] sm:$0xff] }
 0x342   :  { %v2864_v43 = vmax.f32 %v1165_v35, 0.0  ;;  %v2866_v48 = vmax.f32 %v1167_v37, 0.0  ;;  %v2873_v19 = vmax.f32 %v1166_v36, 0.0  ;;  %v2875_v25 = vmax.f32 %v1168_v39, 0.0 }
 0x343   :  { %v2868_v60 = vmax.f32 %v1169_v29, 0.0  ;;  %v2877_v7 = vmax.f32 %v1170_v41, 0.0  ;;  %v2882_v51 = vmax.f32 %v1171_v42, 0.0 }
 0x344   :  { %1198 = vperm.xlu1 %2227, %v2866_v48   ;;  %1188 = vperm.xlu0 %2226, %v2864_v43  }
 0x345   :  { %1208 = vperm.xlu2 %2224, %v2868_v60  }
 0x34c   :  { %1203 = vperm.xlu1 %2227, %v2875_v25   ;;  %1193 = vperm.xlu0 %2226, %v2873_v19  }
 0x34d   :  { %1213 = vperm.xlu2 %2224, %v2877_v7  }
 0x350   :  { %v1970_v47 = vpop.permute.xlu2 %1969 }
 0x351   :  { %v1973_v55 = vmul.f32 %v2313_v11, %v1970_v47 }
 0x354   :  { %2228 = vset.pattern.permute.xlu1 %v2354_v13  ;;  %1218 = vperm.xlu0 %2226, %v2882_v51  }
 0x355   :  { %2229 = vset.pattern.permute.xlu2 %v2354_v13  ;;  %1236 = vperm.xlu1 %2228, %v2864_v43  }
 0x356   :  { %1240 = vperm.xlu2 %2229, %v2873_v19  }
 0x35c   :  { %2230 = vset.pattern.permute.xlu0 %v2354_v13 }
 0x35d   :  { %1248 = vperm.xlu1 %2228, %v2875_v25   ;;  %1244 = vperm.xlu0 %2230, %v2866_v48  }
 0x35e   :  { %1252 = vperm.xlu2 %2229, %v2868_v60  }
 0x365   :  { %1256 = vperm.xlu1 %2228, %v2877_v7   ;;  %2231 = vset.pattern.permute.xlu0 %v2356_v38 }
 0x366   :  { %1260 = vperm.xlu2 %2229, %v2882_v51   ;;  %1278 = vperm.xlu0 %2231, %v2864_v43  }
 0x36d   :  { %2232 = vset.pattern.permute.xlu1 %v2356_v38 }
 0x36e   :  { %2233 = vset.pattern.permute.xlu2 %v2356_v38  ;;  %1282 = vperm.xlu1 %2232, %v2873_v19  }
 0x36f   :  { %1286 = vperm.xlu2 %2233, %v2866_v48   ;;  %1298 = vperm.xlu0 %2231, %v2877_v7  }
 0x375   :  { %v1976_v57 = vpop.permute.xlu1 %1975 }
 0x376   :  { %1290 = vperm.xlu1 %2232, %v2875_v25   ;;  %v1979_v61 = vmul.f32 %v2314_v54, %v1976_v57  ;;  %v1184_v57 = vld [vmem:[%s3576_s0 + $0x190] sm:$0xff] }
 0x377   :  { %1294 = vperm.xlu2 %2233, %v2868_v60   ;;  %2235 = vset.pattern.permute.xlu0 %v2357_v40 }
 0x378   :  { %1324 = vperm.xlu0 %2235, %v2873_v19   ;;  %v1980_v62 = vadd.f32 %v1979_v61, %v1973_v55  ;;  %v2364_v55 = vmov 8   ;;  %v1270_v61 = vld [vmem:[%s3576_s0 + $0x1d8] sm:$0xff] }
 0x37a   :  { %v1983_v63 = vadd.f32 %v2315_v58, %v1980_v62  ;;  %v1233_v58 = vld [vmem:[%s3576_s0 + $0x1c8] sm:$0xff] }
 0x37c   :  { %v1984_v0 = vmax.f32 %v1983_v63, 0.0 }
 0x37e   :  { %1302 = vperm.xlu1 %2232, %v2882_v51   ;;  %2202 = vmatmul.msk.f32.vlgmr.msra.gmra.mxu0 %vm1993_vm4, %v1984_v0 }
 0x37f   :  { %2234 = vset.pattern.permute.xlu2 %v2357_v40 }
 0x380   :  { %1320 = vperm.xlu2 %2234, %v2864_v43   ;;  %1344 = vperm.xlu0 %2235, %v2882_v51  }
 0x386   :  { %2236 = vset.pattern.permute.xlu1 %v2357_v40  ;;  %v1181_v40 = vld [vmem:[%s3576_s0 + $0x178] sm:$0xff] }
 0x387   :  { %1328 = vperm.xlu1 %2236, %v2866_v48  }
 0x388   :  { %1332 = vperm.xlu2 %2234, %v2875_v25   ;;  %2239 = vset.pattern.permute.xlu0 %v2358_v45 }
 0x389   :  { %1370 = vperm.xlu0 %2239, %v2866_v48  }
 0x38f   :  { %1336 = vperm.xlu1 %2236, %v2868_v60  }
 0x390   :  { %1340 = vperm.xlu2 %2234, %v2877_v7  }
 0x391   :  { %2240 = vset.pattern.permute.xlu0 %v2359_v50 }
 0x392   :  { %1404 = vperm.xlu0 %2240, %v2864_v43  }
 0x397   :  { %2237 = vset.pattern.permute.xlu1 %v2358_v45 }
 0x398   :  { %2238 = vset.pattern.permute.xlu2 %v2358_v45  ;;  %1362 = vperm.xlu1 %2237, %v2864_v43   ;;  %v1182_v45 = vld [vmem:[%s3576_s0 + $0x180] sm:$0xff] }
 0x399   :  { %1366 = vperm.xlu2 %2238, %v2873_v19  }
 0x39a   :  { %1424 = vperm.xlu0 %2240, %v2877_v7  }
 0x39f   :  { %v1209_v12 = vpop.permute.xlu2 %1208 }
 0x3a0   :  { %1374 = vperm.xlu1 %2237, %v2875_v25   ;;  %v1225_v6 = vmul.f32 %v1209_v12, %v1183_v18 }
 0x3a1   :  { %1378 = vperm.xlu2 %2238, %v2868_v60  }
 0x3a2   :  { %2244 = vset.pattern.permute.xlu0 %v2360_v1 }
 0x3a3   :  { %1450 = vperm.xlu0 %2244, %v2873_v19  }
 0x3a7   :  { %v2952_v2 = vpop.permute.xlu2 %1213 }
 0x3a8   :  { %1382 = vperm.xlu1 %2237, %v2877_v7   ;;  %v1226_v63 = vmul.f32 %v2952_v2, %v1184_v57  ;;  %v1318_v57 = vld [vmem:[%s3576_s0 + $0x240] sm:$0xf] }
 0x3a9   :  { %1386 = vperm.xlu2 %2238, %v2882_v51  }
 0x3ab   :  { %2248 = vset.pattern.permute.xlu0 %v2361_v8 }
 0x3ac   :  { %1596 = vperm.xlu0 %2248, %v2882_v51  }
 0x3b0   :  { %v1241_v3 = vpop.permute.xlu2 %1240  ;;  %2241 = vset.pattern.permute.xlu1 %v2359_v50 }
 0x3b1   :  { %2242 = vset.pattern.permute.xlu2 %v2359_v50  ;;  %1408 = vperm.xlu1 %2241, %v2873_v19   ;;  %v1264_v27 = vmul.f32 %v1241_v3, %v1229_v17  ;;  %v1312_v3 = vld [vmem:[%s3576_s0 + $0x210] sm:$0xff] }
 0x3b2   :  { %1412 = vperm.xlu2 %2242, %v2866_v48  }
 0x3b4   :  { %2253 = vset.pattern.permute.xlu0 %v2362_v16 }
 0x3b5   :  { %1806 = vperm.xlu0 %2253, %v2882_v51  }
 0x3b6   :  { %v1199_v20 = vpop.permute.xlu1 %1198  ;;  %v1189_v21 = vpop.permute.xlu0 %1188 }
 0x3b7   :  { %v1221_v39 = vmul.f32 %v1189_v21, %v1179_v15  ;;  %v1223_v49 = vmul.f32 %v1199_v20, %v1181_v40 }
 0x3b8   :  { %v1253_v5 = vpop.permute.xlu2 %1252 }
 0x3b9   :  { %v1267_v24 = vmul.f32 %v1253_v5, %v1232_v22  ;;  %1416 = vperm.xlu1 %2241, %v2875_v25   ;;  %v2365_v5 = vmov 10  }
 0x3ba   :  { %1420 = vperm.xlu2 %2242, %v2868_v60  }
 0x3bb   :  { %v2970_v23 = vadd.f32 %v1267_v24, %v1225_v6  ;;  %v2366_v6 = vmov 11  }
 0x3bd   :  { %2258 = vset.pattern.permute.xlu0 %v2361_v8 }
 0x3be   :  { %1592 = vperm.xlu0 %2258, %v2877_v7   ;;  %v1204_v30 = vpop.permute.xlu1 %1203  ;;  %v1194_v44 = vpop.permute.xlu0 %1193 }
 0x3bf   :  { %v1222_v46 = vmul.f32 %v1194_v44, %v1180_v26  ;;  %v1224_v50 = vmul.f32 %v1204_v30, %v1182_v45  ;;  %v2367_v44 = vmov 12  }
 0x3c0   :  { %v1261_v59 = vpop.permute.xlu2 %1260 }
 0x3c1   :  { %v2980_v4 = vadd.f32 %v1264_v27, %v1222_v46  ;;  %1428 = vperm.xlu1 %2241, %v2882_v51   ;;  %v1269_v35 = vmul.f32 %v1261_v59, %v1234_v28  ;;  %v3578_v27 = vmov 13   ;;  %v1315_v46 = vld [vmem:[%s3576_s0 + $0x228] sm:$0xff]  ;;  %v1273_v59 = vld [vmem:[%s3576_s0 + $0x1f0] sm:$0xff]  ;;  %v1271_v28 = vld [vmem:[%s3576_s0 + $0x1e0] sm:$0xff] }
 0x3c2   :  { %2243 = vset.pattern.permute.xlu2 %v2360_v1 }
 0x3c3   :  { %1446 = vperm.xlu2 %2243, %v2864_v43  }
 0x3c6   :  { %2263 = vset.pattern.permute.xlu0 %v2362_v16  ;;  %v1219_v34 = vpop.permute.xlu0 %1218 }
 0x3c7   :  { %1802 = vperm.xlu0 %2263, %v2877_v7   ;;  %v1227_v36 = vmul.f32 %v1219_v34, %v1185_v31  ;;  %v1237_v37 = vpop.permute.xlu1 %1236  ;;  %v1275_v31 = vld [vmem:[%s3576_s0 + $0x200] sm:$0xff]  ;;  %v1313_v34 = vld [vmem:[%s3576_s0 + $0x218] sm:$0xff] }
 0x3c8   :  { %v1263_v29 = vmul.f32 %v1237_v37, %v1228_v32  ;;  %v1317_v32 = vld [vmem:[%s3576_s0 + $0x238] sm:$0xff] }
 0x3c9   :  { %v2999_v41 = vadd.f32 %v1269_v35, %v1227_v36  ;;  %v3001_v42 = vpop.permute.xlu2 %1286  ;;  %2245 = vset.pattern.permute.xlu1 %v2360_v1 }
 0x3ca   :  { %v1858_v38 = vadd.f32 %v1263_v29, %v1221_v39  ;;  %1454 = vperm.xlu1 %2245, %v2866_v48  }
 0x3cb   :  { %1470 = vperm.xlu2 %2243, %v2882_v51  }
 0x3cf   :  { %2268 = vset.pattern.permute.xlu0 %v2361_v8  ;;  %v1249_v10 = vpop.permute.xlu1 %1248  ;;  %v1245_v33 = vpop.permute.xlu0 %1244 }
 0x3d0   :  { %v1266_v52 = vmul.f32 %v1249_v10, %v1231_v14  ;;  %1588 = vperm.xlu0 %2268, %v2868_v60   ;;  %v1265_v11 = vmul.f32 %v1245_v33, %v1230_v9 }
 0x3d1   :  { %v3020_v53 = vpop.permute.xlu2 %1294 }
 0x3d2   :  { %v1861_v54 = vadd.f32 %v1266_v52, %v1224_v50  ;;  %v3022_v47 = vadd.f32 %v1265_v11, %v1223_v49  ;;  %2246 = vset.pattern.permute.xlu1 %v2363_v56  ;;  %v2369_v49 = vmov 15   ;;  %v1276_v50 = vld [vmem:[%s3576_s0 + $0x208] sm:$0xf] }
 0x3d3   :  { %2247 = vset.pattern.permute.xlu2 %v2364_v55  ;;  %1512 = vperm.xlu1 %2246, %v2882_v51  }
 0x3d4   :  { %1554 = vperm.xlu2 %2247, %v2882_v51  }
 0x3d7   :  { %v1257_v62 = vpop.permute.xlu1 %1256 }
 0x3d8   :  { %v1268_v0 = vmul.f32 %v1257_v62, %v1233_v58  ;;  %2273 = vset.pattern.permute.xlu0 %v2362_v16  ;;  %v1279_v12 = vpop.permute.xlu0 %1278 }
 0x3d9   :  { %1798 = vperm.xlu0 %2273, %v2868_v60   ;;  %v1305_v18 = vmul.f32 %v1279_v12, %v1270_v61  ;;  %v1314_v12 = vld [vmem:[%s3576_s0 + $0x220] sm:$0xff] }
 0x3da   :  { %v1863_v20 = vadd.f32 %v1268_v0, %v1226_v63  ;;  %v1321_v21 = vpop.permute.xlu2 %1320 }
 0x3db   :  { %v1347_v22 = vmul.f32 %v1321_v21, %v1312_v3  ;;  %2249 = vset.pattern.permute.xlu1 %v2365_v5 }
 0x3dc   :  { %2250 = vset.pattern.permute.xlu2 %v2366_v6  ;;  %1638 = vperm.xlu1 %2249, %v2882_v51  }
 0x3dd   :  { %v1865_v2 = vadd.f32 %v1347_v22, %v1305_v18  ;;  %1680 = vperm.xlu2 %2250, %v2882_v51  }
 0x3df   :  { %v3047_v24 = vadd.f32 %v1865_v2, %v1858_v38 }
 0x3e0   :  { %v1283_v17 = vpop.permute.xlu1 %1282 }
 0x3e1   :  { %2278 = vset.pattern.permute.xlu0 %v2361_v8  ;;  %v1299_v26 = vpop.permute.xlu0 %1298  ;;  %v1306_v37 = vmul.f32 %v1283_v17, %v1271_v28  ;;  %v1274_v17 = vld [vmem:[%s3576_s0 + $0x1f8] sm:$0xff] }
 0x3e2   :  { %v1333_v30 = vpop.permute.xlu2 %1332  ;;  %1584 = vperm.xlu0 %2278, %v2875_v25   ;;  %v1310_v38 = vmul.f32 %v1299_v26, %v1275_v31  ;;  %v1396_v31 = vld [vmem:[%s3576_s0 + $0x280] sm:$0xff] }
 0x3e3   :  { %v1350_v35 = vmul.f32 %v1333_v30, %v1315_v46 }
 0x3e4   :  { %2251 = vset.pattern.permute.xlu1 %v2367_v44 }
 0x3e5   :  { %2252 = vset.pattern.permute.xlu2 %v3578_v27  ;;  %1722 = vperm.xlu1 %2251, %v2882_v51  }
 0x3e6   :  { %1764 = vperm.xlu2 %2252, %v2882_v51  }
 0x3e8   :  { %v1291_v15 = vpop.permute.xlu1 %1290 }
 0x3e9   :  { %v1308_v36 = vmul.f32 %v1291_v15, %v1273_v59 }
 0x3ea   :  { %v1341_v39 = vpop.permute.xlu2 %1340  ;;  %2283 = vset.pattern.permute.xlu0 %v2362_v16  ;;  %v1325_v29 = vpop.permute.xlu0 %1324 }
 0x3eb   :  { %v1868_v40 = vadd.f32 %v1350_v35, %v1308_v36  ;;  %v1352_v45 = vmul.f32 %v1341_v39, %v1317_v32  ;;  %v1348_v14 = vmul.f32 %v1325_v29, %v1313_v34  ;;  %1794 = vperm.xlu0 %2283, %v2875_v25   ;;  %v1398_v34 = vld [vmem:[%s3576_s0 + $0x290] sm:$0xff] }
 0x3ed   :  { %v3075_v9 = vadd.f32 %v1868_v40, %v1861_v54  ;;  %v1870_v10 = vadd.f32 %v1352_v45, %v1310_v38  ;;  %v1866_v33 = vadd.f32 %v1348_v14, %v1306_v37  ;;  %2254 = vset.pattern.permute.xlu1 %v2369_v49  ;;  %v1358_v45 = vld [vmem:[%s3576_s0 + $0x268] sm:$0xff] }
 0x3ee   :  { %2255 = vset.pattern.permute.xlu2 %v2360_v1  ;;  %1848 = vperm.xlu1 %2254, %v2882_v51  }
 0x3ef   :  { %v3083_v52 = vadd.f32 %v1870_v10, %v1863_v20  ;;  %v3086_v11 = vadd.f32 %v1866_v33, %v2980_v4  ;;  %1466 = vperm.xlu2 %2255, %v2877_v7   ;;  %v1272_v4 = vld [vmem:[%s3576_s0 + $0x1e8] sm:$0xff]  ;;  %v1400_v10 = vld [vmem:[%s3576_s0 + $0x2a0] sm:$0xff] }
 0x3f0   :  { %v1303_v54 = vpop.permute.xlu1 %1302  ;;  %v1307_v18 = vmul.f32 %v3001_v42, %v1272_v4  ;;  %v1316_v42 = vld [vmem:[%s3576_s0 + $0x230] sm:$0xff] }
 0x3f1   :  { %v1311_v58 = vmul.f32 %v1303_v54, %v1276_v50 }
 0x3f2   :  { %v1345_v61 = vpop.permute.xlu0 %1344 }
 0x3f3   :  { %v1353_v62 = vmul.f32 %v1345_v61, %v1318_v57  ;;  %v3092_v51 = vpop.permute.xlu2 %1366  ;;  %2286 = vset.pattern.permute.xlu0 %v2364_v55  ;;  %v1355_v61 = vld [vmem:[%s3576_s0 + $0x250] sm:$0xff] }
 0x3f4   :  { %1538 = vperm.xlu0 %2286, %v2866_v48   ;;  %v1390_v4 = vmul.f32 %v3092_v51, %v1355_v61 }
 0x3f5   :  { %v1871_v63 = vadd.f32 %v1353_v62, %v1311_v58  ;;  %v1397_v62 = vld [vmem:[%s3576_s0 + $0x288] sm:$0xff] }
 0x3f6   :  { %2256 = vset.pattern.permute.xlu1 %v2363_v56 }
 0x3f7   :  { %v3101_v0 = vadd.f32 %v1871_v63, %v2999_v41  ;;  %2257 = vset.pattern.permute.xlu2 %v2364_v55  ;;  %1508 = vperm.xlu1 %2256, %v2877_v7  }
 0x3f8   :  { %1550 = vperm.xlu2 %2257, %v2877_v7  }
 0x3f9   :  { %v1329_v3 = vpop.permute.xlu1 %1328 }
 0x3fa   :  { %v1349_v20 = vmul.f32 %v1329_v3, %v1314_v12 }
 0x3fb   :  { %v1379_v21 = vpop.permute.xlu2 %1378  ;;  %v1371_v2 = vpop.permute.xlu0 %1370 }
 0x3fc   :  { %v1867_v22 = vadd.f32 %v1349_v20, %v1307_v18  ;;  %2291 = vset.pattern.permute.xlu0 %v3578_v27  ;;  %v1393_v50 = vmul.f32 %v1379_v21, %v1358_v45  ;;  %v1357_v20 = vld [vmem:[%s3576_s0 + $0x260] sm:$0xff]  ;;  %v1399_v21 = vld [vmem:[%s3576_s0 + $0x298] sm:$0xff] }
 0x3fd   :  { %1748 = vperm.xlu0 %2291, %v2866_v48  }
 0x3fe   :  { %v3113_v41 = vadd.f32 %v1867_v22, %v3022_v47  ;;  %v1309_v47 = vmul.f32 %v3020_v53, %v1274_v17  ;;  %v1354_v53 = vld [vmem:[%s3576_s0 + $0x248] sm:$0xff] }
 0x3ff   :  { %2259 = vset.pattern.permute.xlu1 %v2365_v5 }
 0x400   :  { %2260 = vset.pattern.permute.xlu2 %v2366_v6  ;;  %1634 = vperm.xlu1 %2259, %v2877_v7  }
 0x401   :  { %1676 = vperm.xlu2 %2260, %v2877_v7   ;;  %v1337_v26 = vpop.permute.xlu1 %1336 }
 0x402   :  { %v1351_v30 = vmul.f32 %v1337_v26, %v1316_v42 }
 0x403   :  { %v3126_v46 = vpop.permute.xlu2 %1386 }
 0x404   :  { %v1869_v59 = vadd.f32 %v1351_v30, %v1309_v47  ;;  %v1405_v15 = vpop.permute.xlu0 %1404 }
 0x405   :  { %2296 = vset.pattern.permute.xlu0 %v2361_v8  ;;  %v1431_v35 = vmul.f32 %v1405_v15, %v1396_v31 }
 0x406   :  { %v3130_v28 = vadd.f32 %v1869_v59, %v2970_v23  ;;  %1576 = vperm.xlu0 %2296, %v2873_v19   ;;  %v1356_v23 = vld [vmem:[%s3576_s0 + $0x258] sm:$0xff] }
 0x407   :  { %v1391_v39 = vmul.f32 %v1371_v2, %v1356_v23 }
 0x408   :  { %2261 = vset.pattern.permute.xlu1 %v2367_v44 }
 0x409   :  { %2262 = vset.pattern.permute.xlu2 %v3578_v27  ;;  %1718 = vperm.xlu1 %2261, %v2877_v7  }
 0x40a   :  { %1760 = vperm.xlu2 %2262, %v2877_v7   ;;  %v1363_v32 = vpop.permute.xlu1 %1362 }
 0x40b   :  { %v1389_v36 = vmul.f32 %v1363_v32, %v1354_v53 }
 0x40c   :  { %v1413_v37 = vpop.permute.xlu2 %1412  ;;  %v3212_v30 = vpop.permute.xlu0 %1424 }
 0x40d   :  { %v3149_v29 = vadd.f32 %v1431_v35, %v1389_v36  ;;  %v1433_v38 = vmul.f32 %v1413_v37, %v1398_v34  ;;  %v1486_v34 = vld [vmem:[%s3576_s0 + $0x320] sm:$0xf]  ;;  %v1444_v35 = vld [vmem:[%s3576_s0 + $0x2e8] sm:$0xf]  ;;  %v1402_v36 = vld [vmem:[%s3576_s0 + $0x2b0] sm:$0xf] }
 0x40e   :  { %2301 = vset.pattern.permute.xlu0 %v2362_v16  ;;  %v1612_v37 = vld [vmem:[%s3576_s0 + $0x3c8] sm:$0xf] }
 0x40f   :  { %v3152_v40 = vadd.f32 %v1433_v38, %v1391_v39  ;;  %1786 = vperm.xlu0 %2301, %v2873_v19   ;;  %v1528_v39 = vld [vmem:[%s3576_s0 + $0x358] sm:$0xf] }
 0x411   :  { %2264 = vset.pattern.permute.xlu1 %v2369_v49 }
 0x412   :  { %2265 = vset.pattern.permute.xlu2 %v2360_v1  ;;  %1844 = vperm.xlu1 %2264, %v2877_v7   ;;  %v1375_v14 = vpop.permute.xlu1 %1374 }
 0x413   :  { %1462 = vperm.xlu2 %2265, %v2868_v60   ;;  %v1392_v22 = vmul.f32 %v1375_v14, %v1357_v20  ;;  %v1360_v14 = vld [vmem:[%s3576_s0 + $0x278] sm:$0xf]  ;;  %v1822_v20 = vld [vmem:[%s3576_s0 + $0x4e0] sm:$0xf] }
 0x414   :  { %v1421_v33 = vpop.permute.xlu2 %1420 }
 0x415   :  { %v1435_v54 = vmul.f32 %v1421_v33, %v1400_v10  ;;  %v1654_v10 = vld [vmem:[%s3576_s0 + $0x400] sm:$0xf]  ;;  %v1570_v33 = vld [vmem:[%s3576_s0 + $0x390] sm:$0xf] }
 0x417   :  { %v3165_v57 = vadd.f32 %v1435_v54, %v1393_v50  ;;  %2306 = vset.pattern.permute.xlu0 %v2365_v5  ;;  %v1780_v54 = vld [vmem:[%s3576_s0 + $0x4a8] sm:$0xf] }
 0x418   :  { %1614 = vperm.xlu0 %2306, %v2864_v43  }
 0x41a   :  { %2266 = vset.pattern.permute.xlu1 %v2363_v56  ;;  %v3170_v58 = vpop.permute.xlu1 %1382 }
 0x41b   :  { %2267 = vset.pattern.permute.xlu2 %v2364_v55  ;;  %1504 = vperm.xlu1 %2266, %v2868_v60  }
 0x41c   :  { %1546 = vperm.xlu2 %2267, %v2868_v60  }
 0x41d   :  { %v3175_v7 = vpop.permute.xlu2 %1446 }
 0x420   :  { %2311 = vset.pattern.permute.xlu0 %v2369_v49 }
 0x421   :  { %1824 = vperm.xlu0 %2311, %v2864_v43  }
 0x423   :  { %2269 = vset.pattern.permute.xlu1 %v2365_v5  ;;  %v1409_v63 = vpop.permute.xlu1 %1408 }
 0x424   :  { %2270 = vset.pattern.permute.xlu2 %v2366_v6  ;;  %v1432_v12 = vmul.f32 %v1409_v63, %v1397_v62  ;;  %1630 = vperm.xlu1 %2269, %v2868_v60  }
 0x425   :  { %1672 = vperm.xlu2 %2270, %v2868_v60   ;;  %v1471_v3 = vpop.permute.xlu2 %1470 }
 0x426   :  { %v3190_v18 = vadd.f32 %v1432_v12, %v1390_v4  ;;  %v1479_v50 = vmul.f32 %v1471_v3, %v1444_v35  ;;  %v1738_v12 = vld [vmem:[%s3576_s0 + $0x470] sm:$0xf] }
 0x429   :  { %2312 = vset.pattern.permute.xlu0 %v2354_v13 }
 0x42b   :  { %v1417_v51 = vpop.permute.xlu1 %1416 }
 0x42c   :  { %v1434_v2 = vmul.f32 %v1417_v51, %v1399_v21  ;;  %2271 = vset.pattern.permute.xlu1 %v2367_v44  ;;  %v1395_v21 = vmul.f32 %v3126_v46, %v1360_v14  ;;  %v1443_v14 = vld [vmem:[%s3576_s0 + $0x2e0] sm:$0xff] }
 0x42d   :  { %2272 = vset.pattern.permute.xlu2 %v3578_v27  ;;  %1714 = vperm.xlu1 %2271, %v2868_v60  }
 0x42e   :  { %v3202_v17 = vadd.f32 %v1434_v2, %v1392_v22  ;;  %1756 = vperm.xlu2 %2272, %v2868_v60   ;;  %v1555_v42 = vpop.permute.xlu2 %1554 }
 0x42f   :  { %v1563_v4 = vmul.f32 %v1555_v42, %v1528_v39 }
 0x433   :  { %v1429_v26 = vpop.permute.xlu1 %1428 }
 0x434   :  { %v1437_v62 = vmul.f32 %v1429_v26, %v1402_v36 }
 0x435   :  { %2274 = vset.pattern.permute.xlu1 %v2369_v49 }
 0x436   :  { %2275 = vset.pattern.permute.xlu2 %v2360_v1  ;;  %1840 = vperm.xlu1 %2274, %v2868_v60   ;;  %v3220_v60 = vpop.permute.xlu0 %1450  ;;  %v1878_v35 = vadd.f32 %v1437_v62, %v1395_v21 }
 0x437   :  { %1458 = vperm.xlu2 %2275, %v2875_v25   ;;  %v1681_v13 = vpop.permute.xlu2 %1680 }
 0x438   :  { %v1689_v51 = vmul.f32 %v1681_v13, %v1654_v10  ;;  %v1359_v13 = vld [vmem:[%s3576_s0 + $0x270] sm:$0xff] }
 0x43c   :  { %v3209_v47 = vpop.permute.xlu1 %1454 }
 0x43e   :  { %2276 = vset.pattern.permute.xlu1 %v2363_v56  ;;  %v1597_v23 = vpop.permute.xlu0 %1596 }
 0x43f   :  { %2277 = vset.pattern.permute.xlu2 %v2364_v55  ;;  %1500 = vperm.xlu1 %2276, %v2875_v25   ;;  %v1605_v2 = vmul.f32 %v1597_v23, %v1570_v33  ;;  %v1394_v33 = vmul.f32 %v3170_v58, %v1359_v13 }
 0x440   :  { %1542 = vperm.xlu2 %2277, %v2875_v25   ;;  %v1765_v59 = vpop.permute.xlu2 %1764 }
 0x441   :  { %v1773_v26 = vmul.f32 %v1765_v59, %v1738_v12  ;;  %v1892_v36 = vadd.f32 %v1605_v2, %v1563_v4  ;;  %v1569_v2 = vld [vmem:[%s3576_s0 + $0x388] sm:$0xff] }
 0x445   :  { %v1513_v31 = vpop.permute.xlu1 %1512 }
 0x446   :  { %v1521_v38 = vmul.f32 %v1513_v31, %v1486_v34  ;;  %v1807_v61 = vpop.permute.xlu0 %1806 }
 0x447   :  { %2279 = vset.pattern.permute.xlu1 %v2365_v5  ;;  %v1815_v31 = vmul.f32 %v1807_v61, %v1780_v54 }
 0x448   :  { %2280 = vset.pattern.permute.xlu2 %v2366_v6  ;;  %1626 = vperm.xlu1 %2279, %v2875_v25   ;;  %v1885_v3 = vadd.f32 %v1521_v38, %v1479_v50 }
 0x449   :  { %1668 = vperm.xlu2 %2280, %v2875_v25   ;;  %v3223_v1 = vpop.permute.xlu2 %1466 }
 0x44a   :  { %v1478_v61 = vmul.f32 %v3223_v1, %v1443_v14 }
 0x44e   :  { %v1639_v15 = vpop.permute.xlu1 %1638 }
 0x44f   :  { %v1647_v63 = vmul.f32 %v1639_v15, %v1612_v37  ;;  %v1927_v37 = vadd.f32 %v1885_v3, %v1878_v35  ;;  %v1653_v3 = vld [vmem:[%s3576_s0 + $0x3f8] sm:$0xff] }
 0x450   :  { %2281 = vset.pattern.permute.xlu1 %v2367_v44 }
 0x451   :  { %2282 = vset.pattern.permute.xlu2 %v3578_v27  ;;  %1710 = vperm.xlu1 %2281, %v2875_v25   ;;  %v1899_v15 = vadd.f32 %v1689_v51, %v1647_v63  ;;  %v1948_v38 = vadd.f32 %v1927_v37, %v3101_v0  ;;  %v1611_v51 = vld [vmem:[%s3576_s0 + $0x3c0] sm:$0xff] }
 0x452   :  { %1752 = vperm.xlu2 %2282, %v2875_v25   ;;  %v3229_v53 = vpop.permute.xlu2 %1550 }
 0x453   :  { %v1934_v59 = vadd.f32 %v1899_v15, %v1892_v36  ;;  %v1821_v15 = vld [vmem:[%s3576_s0 + $0x4d8] sm:$0xff] }
 0x457   :  { %v1723_v32 = vpop.permute.xlu1 %1722 }
 0x459   :  { %2284 = vset.pattern.permute.xlu1 %v2369_v49 }
 0x45a   :  { %2285 = vset.pattern.permute.xlu2 %v2363_v56  ;;  %1836 = vperm.xlu1 %2284, %v2875_v25   ;;  %v1696_v25 = vld [vmem:[%s3576_s0 + $0x438] sm:$0xf] }
 0x45b   :  { %1496 = vperm.xlu2 %2285, %v2866_v48   ;;  %v3250_v45 = vpop.permute.xlu2 %1676  ;;  %v1731_v22 = vmul.f32 %v1723_v32, %v1696_v25  ;;  %v1401_v32 = vld [vmem:[%s3576_s0 + $0x2a8] sm:$0xff]  ;;  %v1485_v25 = vld [vmem:[%s3576_s0 + $0x318] sm:$0xff] }
 0x45c   :  { %v1688_v36 = vmul.f32 %v3250_v45, %v1653_v3 }
 0x45d   :  { %v1906_v39 = vadd.f32 %v1773_v26, %v1731_v22  ;;  %v1695_v22 = vld [vmem:[%s3576_s0 + $0x430] sm:$0xff]  ;;  %v1737_v26 = vld [vmem:[%s3576_s0 + $0x468] sm:$0xff] }
 0x460   :  { %v1849_v34 = vpop.permute.xlu1 %1848 }
 0x461   :  { %v1857_v42 = vmul.f32 %v1849_v34, %v1822_v20  ;;  %v1593_v20 = vpop.permute.xlu0 %1592  ;;  %v1779_v34 = vld [vmem:[%s3576_s0 + $0x4a0] sm:$0xff] }
 0x462   :  { %2287 = vset.pattern.permute.xlu1 %v2361_v8 }
 0x463   :  { %v1913_v27 = vadd.f32 %v1857_v42, %v1815_v31  ;;  %2288 = vset.pattern.permute.xlu2 %v2365_v5  ;;  %1580 = vperm.xlu1 %2287, %v2866_v48  }
 0x464   :  { %1622 = vperm.xlu2 %2288, %v2866_v48   ;;  %v1761_v46 = vpop.permute.xlu2 %1760 }
 0x465   :  { %v1941_v23 = vadd.f32 %v1913_v27, %v1906_v39  ;;  %v1436_v27 = vmul.f32 %v3212_v30, %v1401_v32  ;;  %v1604_v39 = vmul.f32 %v1593_v20, %v1569_v2  ;;  %v1820_v2 = vld [vmem:[%s3576_s0 + $0x4d0] sm:$0xff] }
 0x467   :  { %v1955_v10 = vadd.f32 %v1941_v23, %v1934_v59  ;;  %v1877_v0 = vadd.f32 %v1436_v27, %v1394_v33  ;;  %v1772_v23 = vmul.f32 %v1761_v46, %v1737_v26  ;;  %v1442_v46 = vld [vmem:[%s3576_s0 + $0x2d8] sm:$0xff] }
 0x469   :  { %v1962_v50 = vadd.f32 %v1955_v10, %v1948_v38  ;;  %v1509_v54 = vpop.permute.xlu1 %1508  ;;  %v1803_v35 = vpop.permute.xlu0 %1802 }
 0x46a   :  { %v1520_v62 = vmul.f32 %v1509_v54, %v1485_v25  ;;  %v1814_v59 = vmul.f32 %v1803_v35, %v1779_v34 }
 0x46b   :  { %2289 = vset.pattern.permute.xlu1 %v2366_v6  ;;  %2203 = vmatpush.msk.msrb.mxu0 %vm386_vm8, %v1962_v50 }
 0x46c   :  { %v1884_v63 = vadd.f32 %v1520_v62, %v1478_v61  ;;  %2290 = vset.pattern.permute.xlu2 %v2367_v44  ;;  %1664 = vperm.xlu1 %2289, %v2866_v48  }
 0x46d   :  { %1706 = vperm.xlu2 %2290, %v2866_v48   ;;  %v1463_v58 = vpop.permute.xlu2 %1462 }
 0x46e   :  { %v1926_v4 = vadd.f32 %v1884_v63, %v1877_v0  ;;  %v1477_v61 = vmul.f32 %v1463_v58, %v1442_v46  ;;  %v3580_v63 = vmov 13  }
 0x470   :  { %v1947_v12 = vadd.f32 %v1926_v4, %v3083_v52 }
 0x472   :  { %v1635_v30 = vpop.permute.xlu1 %1634 }
 0x473   :  { %v1646_v31 = vmul.f32 %v1635_v30, %v1611_v51 }
 0x474   :  { %2292 = vset.pattern.permute.xlu1 %v2362_v16 }
 0x475   :  { %2293 = vset.pattern.permute.xlu2 %v2369_v49  ;;  %1790 = vperm.xlu1 %2292, %v2866_v48   ;;  %v1898_v32 = vadd.f32 %v1688_v36, %v1646_v31 }
 0x476   :  { %1832 = vperm.xlu2 %2293, %v2866_v48   ;;  %v3304_v1 = vpop.permute.xlu2 %1546  ;;  %v1527_v48 = vld [vmem:[%s3576_s0 + $0x350] sm:$0xff] }
 0x477   :  { %v1562_v42 = vmul.f32 %v3229_v53, %v1527_v48  ;;  %v1778_v48 = vld [vmem:[%s3576_s0 + $0x498] sm:$0xff] }
 0x479   :  { %v1891_v14 = vadd.f32 %v1604_v39, %v1562_v42 }
 0x47b   :  { %v1719_v21 = vpop.permute.xlu1 %1718  ;;  %v1933_v45 = vadd.f32 %v1898_v32, %v1891_v14 }
 0x47c   :  { %v1730_v37 = vmul.f32 %v1719_v21, %v1695_v22  ;;  %v1736_v22 = vld [vmem:[%s3576_s0 + $0x460] sm:$0xff] }
 0x47d   :  { %2294 = vset.pattern.permute.xlu1 %v2363_v56 }
 0x47e   :  { %2295 = vset.pattern.permute.xlu2 %v2364_v55  ;;  %1492 = vperm.xlu1 %2294, %v2873_v19   ;;  %v1905_v10 = vadd.f32 %v1772_v23, %v1730_v37 }
 0x47f   :  { %1534 = vperm.xlu2 %2295, %v2873_v19   ;;  %v3313_v52 = vpop.permute.xlu2 %1672 }
 0x484   :  { %v1845_v13 = vpop.permute.xlu1 %1844 }
 0x485   :  { %v1856_v38 = vmul.f32 %v1845_v13, %v1821_v15 }
 0x486   :  { %2297 = vset.pattern.permute.xlu1 %v2365_v5  ;;  %v1484_v5 = vld [vmem:[%s3576_s0 + $0x310] sm:$0xff] }
 0x487   :  { %v1912_v25 = vadd.f32 %v1856_v38, %v1814_v59  ;;  %2298 = vset.pattern.permute.xlu2 %v2366_v6  ;;  %1618 = vperm.xlu1 %2297, %v2873_v19   ;;  %v1441_v38 = vld [vmem:[%s3576_s0 + $0x2d0] sm:$0xff] }
 0x488   :  { %1660 = vperm.xlu2 %2298, %v2873_v19   ;;  %v1757_v53 = vpop.permute.xlu2 %1756 }
 0x489   :  { %v1940_v33 = vadd.f32 %v1912_v25, %v1905_v10  ;;  %v1771_v36 = vmul.f32 %v1757_v53, %v1736_v22 }
 0x48b   :  { %v1954_v50 = vadd.f32 %v1940_v33, %v1933_v45  ;;  %v1440_v45 = vld [vmem:[%s3576_s0 + $0x2c8] sm:$0xff]  ;;  %v1482_v33 = vld [vmem:[%s3576_s0 + $0x300] sm:$0xff] }
 0x48d   :  { %v1505_v54 = vpop.permute.xlu1 %1504  ;;  %v1961_v27 = vadd.f32 %v1954_v50, %v1947_v12  ;;  %v1589_v12 = vpop.permute.xlu0 %1588  ;;  %v1475_v50 = vmul.f32 %v3209_v47, %v1440_v45 }
 0x48e   :  { %v1519_v62 = vmul.f32 %v1505_v54, %v1484_v5 }
 0x48f   :  { %2299 = vset.pattern.permute.xlu1 %v2367_v44  ;;  %2034 = vmatpush.msrb.mxu0 %v1961_v27 }
 0x490   :  { %v1883_v0 = vadd.f32 %v1519_v62, %v1477_v61  ;;  %2300 = vset.pattern.permute.xlu2 %v3580_v63  ;;  %1702 = vperm.xlu1 %2299, %v2873_v19  }
 0x491   :  { %1744 = vperm.xlu2 %2300, %v2873_v19   ;;  %v1459_v4 = vpop.permute.xlu2 %1458 }
 0x492   :  { %v1925_v30 = vadd.f32 %v1883_v0, %v3165_v57  ;;  %v1610_v57 = vld [vmem:[%s3576_s0 + $0x3b8] sm:$0xff]  ;;  %v1476_v53 = vmul.f32 %v1459_v4, %v1441_v38  ;;  %v1566_v38 = vld [vmem:[%s3576_s0 + $0x370] sm:$0xff] }
 0x494   :  { %v1946_v20 = vadd.f32 %v1925_v30, %v3130_v28 }
 0x495   :  { %v1799_v3 = vpop.permute.xlu0 %1798 }
 0x496   :  { %v1631_v21 = vpop.permute.xlu1 %1630  ;;  %v1813_v42 = vmul.f32 %v1799_v3, %v1778_v48 }
 0x497   :  { %v1645_v28 = vmul.f32 %v1631_v21, %v1610_v57  ;;  %v1735_v57 = vld [vmem:[%s3576_s0 + $0x458] sm:$0xff] }
 0x498   :  { %2302 = vset.pattern.permute.xlu1 %v2369_v49  ;;  %v1694_v49 = vld [vmem:[%s3576_s0 + $0x428] sm:$0xff] }
 0x499   :  { %2303 = vset.pattern.permute.xlu2 %v2363_v56  ;;  %1828 = vperm.xlu1 %2302, %v2873_v19   ;;  %v1526_v19 = vld [vmem:[%s3576_s0 + $0x348] sm:$0xff] }
 0x49a   :  { %1488 = vperm.xlu2 %2303, %v2864_v43   ;;  %v3358_v58 = vpop.permute.xlu2 %1542  ;;  %v1561_v31 = vmul.f32 %v3304_v1, %v1526_v19  ;;  %v1819_v19 = vld [vmem:[%s3576_s0 + $0x4c8] sm:$0xff] }
 0x49d   :  { %v1585_v30 = vpop.permute.xlu0 %1584 }
 0x49f   :  { %v1715_v51 = vpop.permute.xlu1 %1714 }
 0x4a0   :  { %v1729_v35 = vmul.f32 %v1715_v51, %v1694_v49 }
 0x4a1   :  { %2304 = vset.pattern.permute.xlu1 %v2364_v55  ;;  %v1652_v55 = vld [vmem:[%s3576_s0 + $0x3f0] sm:$0xff] }
 0x4a2   :  { %2305 = vset.pattern.permute.xlu2 %v2361_v8  ;;  %1530 = vperm.xlu1 %2304, %v2864_v43   ;;  %v1568_v8 = vld [vmem:[%s3576_s0 + $0x380] sm:$0xff]  ;;  %v1687_v34 = vmul.f32 %v3313_v52, %v1652_v55  ;;  %v1904_v59 = vadd.f32 %v1771_v36, %v1729_v35 }
 0x4a3   :  { %1572 = vperm.xlu2 %2305, %v2864_v43   ;;  %v3367_v56 = vpop.permute.xlu2 %1668  ;;  %v1603_v26 = vmul.f32 %v1589_v12, %v1568_v8  ;;  %v1777_v12 = vld [vmem:[%s3576_s0 + $0x490] sm:$0xff] }
 0x4a4   :  { %v1897_v37 = vadd.f32 %v1687_v34, %v1645_v28 }
 0x4a5   :  { %v1890_v13 = vadd.f32 %v1603_v26, %v1561_v31  ;;  %v1795_v51 = vpop.permute.xlu0 %1794 }
 0x4a6   :  { %v1812_v3 = vmul.f32 %v1795_v51, %v1777_v12  ;;  %v1438_v51 = vld [vmem:[%s3576_s0 + $0x2b8] sm:$0xff] }
 0x4a7   :  { %v1932_v52 = vadd.f32 %v1897_v37, %v1890_v13 }
 0x4a8   :  { %v1841_v15 = vpop.permute.xlu1 %1840 }
 0x4a9   :  { %v1855_v39 = vmul.f32 %v1841_v15, %v1820_v2 }
 0x4aa   :  { %2307 = vset.pattern.permute.xlu1 %v2366_v6  ;;  %v1483_v6 = vld [vmem:[%s3576_s0 + $0x308] sm:$0xff] }
 0x4ab   :  { %v1911_v23 = vadd.f32 %v1855_v39, %v1813_v42  ;;  %2308 = vset.pattern.permute.xlu2 %v2367_v44  ;;  %1656 = vperm.xlu1 %2307, %v2864_v43  }
 0x4ac   :  { %1698 = vperm.xlu2 %2308, %v2864_v43   ;;  %v1753_v1 = vpop.permute.xlu2 %1752 }
 0x4ad   :  { %v1939_v32 = vadd.f32 %v1911_v23, %v1904_v59  ;;  %v1770_v22 = vmul.f32 %v1753_v1, %v1735_v57  ;;  %v1539_v59 = vpop.permute.xlu0 %1538  ;;  %v1650_v23 = vld [vmem:[%s3576_s0 + $0x3e0] sm:$0xff]  ;;  %v1480_v57 = vld [vmem:[%s3576_s0 + $0x2f0] sm:$0xff] }
 0x4af   :  { %v1953_v14 = vadd.f32 %v1939_v32, %v1932_v52  ;;  %v1608_v52 = vld [vmem:[%s3576_s0 + $0x3a8] sm:$0xff]  ;;  %v1692_v32 = vld [vmem:[%s3576_s0 + $0x418] sm:$0xff] }
 0x4b1   :  { %v1501_v10 = vpop.permute.xlu1 %1500  ;;  %v1960_v25 = vadd.f32 %v1953_v14, %v1946_v20 }
 0x4b2   :  { %v1518_v44 = vmul.f32 %v1501_v10, %v1483_v6  ;;  %v1524_v6 = vld [vmem:[%s3576_s0 + $0x338] sm:$0xff]  ;;  %v1734_v10 = vld [vmem:[%s3576_s0 + $0x450] sm:$0xff] }
 0x4b3   :  { %2309 = vset.pattern.permute.xlu1 %v3580_v63  ;;  %2035 = vmatpush.msrb.mxu0 %v1960_v25 }
 0x4b4   :  { %v1882_v46 = vadd.f32 %v1518_v44, %v1476_v53  ;;  %2310 = vset.pattern.permute.xlu2 %v2362_v16  ;;  %1740 = vperm.xlu1 %2309, %v2864_v43   ;;  %v1818_v53 = vld [vmem:[%s3576_s0 + $0x4c0] sm:$0xff]  ;;  %v1776_v44 = vld [vmem:[%s3576_s0 + $0x488] sm:$0xff] }
 0x4b5   :  { %1782 = vperm.xlu2 %2310, %v2864_v43   ;;  %v1497_v5 = vpop.permute.xlu2 %1496  ;;  %v1609_v43 = vld [vmem:[%s3576_s0 + $0x3b0] sm:$0xff]  ;;  %v1749_v25 = vpop.permute.xlu0 %1748 }
 0x4b6   :  { %v1924_v54 = vadd.f32 %v1882_v46, %v3202_v17  ;;  %v1517_v27 = vmul.f32 %v1497_v5, %v1482_v33  ;;  %v1525_v17 = vld [vmem:[%s3576_s0 + $0x340] sm:$0xff]  ;;  %v1559_v5 = vmul.f32 %v1539_v59, %v1524_v6 }
 0x4b7   :  { %v1560_v55 = vmul.f32 %v3358_v58, %v1525_v17 }
 0x4b8   :  { %v1881_v61 = vadd.f32 %v1517_v27, %v1475_v50  ;;  %v1945_v62 = vadd.f32 %v1924_v54, %v3075_v9  ;;  %v1651_v9 = vld [vmem:[%s3576_s0 + $0x3e8] sm:$0xff]  ;;  %v1769_v54 = vmul.f32 %v1749_v25, %v1734_v10 }
 0x4b9   :  { %v1686_v49 = vmul.f32 %v3367_v56, %v1651_v9  ;;  %v1439_v9 = vld [vmem:[%s3576_s0 + $0x2c0] sm:$0xff] }
 0x4ba   :  { %v1923_v0 = vadd.f32 %v1881_v61, %v3152_v40  ;;  %v1627_v63 = vpop.permute.xlu1 %1626  ;;  %v1567_v40 = vld [vmem:[%s3576_s0 + $0x378] sm:$0xff] }
 0x4bb   :  { %v1644_v21 = vmul.f32 %v1627_v63, %v1609_v43  ;;  %v1602_v28 = vmul.f32 %v1585_v30, %v1567_v40 }
 0x4bc   :  { %v3417_v4 = vadd.f32 %v1923_v0, %v3113_v41  ;;  %v1693_v41 = vld [vmem:[%s3576_s0 + $0x420] sm:$0xff] }
 0x4bd   :  { %v1896_v2 = vadd.f32 %v1686_v49, %v1644_v21  ;;  %v1889_v34 = vadd.f32 %v1602_v28, %v1560_v55  ;;  %v1474_v21 = vmul.f32 %v3220_v60, %v1439_v9  ;;  %v1473_v49 = vmul.f32 %v3175_v7, %v1438_v51  ;;  %v1523_v7 = vld [vmem:[%s3576_s0 + $0x330] sm:$0xff] }
 0x4be   :  { %v1623_v16 = vpop.permute.xlu2 %1622 }
 0x4bf   :  { %v1931_v42 = vadd.f32 %v1896_v2, %v1889_v34  ;;  %v1643_v45 = vmul.f32 %v1623_v16, %v1608_v52  ;;  %v1481_v16 = vld [vmem:[%s3576_s0 + $0x2f8] sm:$0xff]  ;;  %v1577_v2 = vpop.permute.xlu0 %1576  ;;  %v1607_v34 = vld [vmem:[%s3576_s0 + $0x3a0] sm:$0xff] }
 0x4c3   :  { %v1711_v20 = vpop.permute.xlu1 %1710 }
 0x4c4   :  { %v1728_v8 = vmul.f32 %v1711_v20, %v1693_v41 }
 0x4c6   :  { %v1903_v35 = vadd.f32 %v1770_v22, %v1728_v8 }
 0x4c7   :  { %v1707_v47 = vpop.permute.xlu2 %1706 }
 0x4c8   :  { %v1727_v33 = vmul.f32 %v1707_v47, %v1692_v32 }
 0x4ca   :  { %v1902_v0 = vadd.f32 %v1769_v54, %v1727_v33  ;;  %v1774_v54 = vld [vmem:[%s3576_s0 + $0x478] sm:$0xff] }
 0x4cc   :  { %v1837_v48 = vpop.permute.xlu1 %1836 }
 0x4cd   :  { %v1854_v31 = vmul.f32 %v1837_v48, %v1819_v19 }
 0x4cf   :  { %v1910_v26 = vadd.f32 %v1854_v31, %v1812_v3 }
 0x4d0   :  { %v1833_v15 = vpop.permute.xlu2 %1832 }
 0x4d1   :  { %v1938_v36 = vadd.f32 %v1910_v26, %v1903_v35  ;;  %v1853_v27 = vmul.f32 %v1833_v15, %v1818_v53  ;;  %v1775_v35 = vld [vmem:[%s3576_s0 + $0x480] sm:$0xff]  ;;  %v1787_v26 = vpop.permute.xlu0 %1786  ;;  %v1733_v15 = vld [vmem:[%s3576_s0 + $0x448] sm:$0xff] }
 0x4d3   :  { %v1952_v37 = vadd.f32 %v1938_v36, %v1931_v42  ;;  %v1817_v42 = vld [vmem:[%s3576_s0 + $0x4b8] sm:$0xff] }
 0x4d5   :  { %v1581_v39 = vpop.permute.xlu1 %1580  ;;  %v1959_v13 = vadd.f32 %v1952_v37, %v1945_v62 }
 0x4d6   :  { %v1601_v46 = vmul.f32 %v1581_v39, %v1566_v38 }
 0x4d7   :  { %2036 = vmatpush.msrb.mxu0 %v1959_v13 }
 0x4d8   :  { %v1888_v63 = vadd.f32 %v1601_v46, %v1559_v5  ;;  %v1648_v5 = vld [vmem:[%s3576_s0 + $0x3d0] sm:$0xff] }
 0x4d9   :  { %v1535_v58 = vpop.permute.xlu2 %1534 }
 0x4da   :  { %v1558_v36 = vmul.f32 %v1535_v58, %v1523_v7  ;;  %v1615_v58 = vpop.permute.xlu0 %1614  ;;  %v2049_v7 = vld [vmem:[%s3576_s0 + $0x130] sm:$0xff] }
 0x4de   :  { %v1665_v56 = vpop.permute.xlu1 %1664 }
 0x4df   :  { %v1685_v14 = vmul.f32 %v1665_v56, %v1650_v23  ;;  %v1810_v56 = vmul.f32 %v1787_v26, %v1775_v35 }
 0x4e1   :  { %v1895_v61 = vadd.f32 %v1685_v14, %v1643_v45 }
 0x4e2   :  { %v1661_v1 = vpop.permute.xlu2 %1660 }
 0x4e3   :  { %v1930_v43 = vadd.f32 %v1895_v61, %v1888_v63  ;;  %v1522_v61 = vld [vmem:[%s3576_s0 + $0x328] sm:$0xff] }
 0x4e7   :  { %v1791_v50 = vpop.permute.xlu1 %1790 }
 0x4e8   :  { %v1811_v62 = vmul.f32 %v1791_v50, %v1776_v44  ;;  %v1606_v50 = vld [vmem:[%s3576_s0 + $0x398] sm:$0xff] }
 0x4ea   :  { %v1909_v30 = vadd.f32 %v1853_v27, %v1811_v62  ;;  %v1816_v62 = vld [vmem:[%s3576_s0 + $0x4b0] sm:$0xff] }
 0x4eb   :  { %v1745_v20 = vpop.permute.xlu2 %1744 }
 0x4ec   :  { %v1937_v17 = vadd.f32 %v1909_v30, %v1902_v0  ;;  %v1768_v23 = vmul.f32 %v1745_v20, %v1733_v15  ;;  %v1825_v0 = vpop.permute.xlu0 %1824  ;;  %v1564_v30 = vld [vmem:[%s3576_s0 + $0x360] sm:$0xff]  ;;  %v1690_v20 = vld [vmem:[%s3576_s0 + $0x408] sm:$0xff] }
 0x4ee   :  { %v1951_v47 = vadd.f32 %v1937_v17, %v1930_v43  ;;  %v1732_v43 = vld [vmem:[%s3576_s0 + $0x440] sm:$0xff]  ;;  %v1641_v17 = vmul.f32 %v1615_v58, %v1606_v50 }
 0x4f0   :  { %v1493_v41 = vpop.permute.xlu1 %1492  ;;  %v1958_v40 = vadd.f32 %v1951_v47, %v3417_v4  ;;  %v1851_v47 = vmul.f32 %v1825_v0, %v1816_v62 }
 0x4f1   :  { %v1516_v12 = vmul.f32 %v1493_v41, %v1481_v16 }
 0x4f2   :  { %2037 = vmatpush.msrb.mxu0 %v1958_v40 }
 0x4f3   :  { %v1880_v19 = vadd.f32 %v1516_v12, %v1474_v21 }
 0x4f4   :  { %v1489_v55 = vpop.permute.xlu2 %1488 }
 0x4f5   :  { %v1922_v8 = vadd.f32 %v1880_v19, %v3190_v18  ;;  %v1515_v28 = vmul.f32 %v1489_v55, %v1480_v57  ;;  %v1649_v18 = vld [vmem:[%s3576_s0 + $0x3d8] sm:$0xff] }
 0x4f6   :  { %v1684_v37 = vmul.f32 %v1661_v1, %v1649_v18  ;;  %v2048_v18 = vld [vmem:[%s3576_s0 + $0x128] sm:$0xff] }
 0x4f7   :  { %v1879_v4 = vadd.f32 %v1515_v28, %v1473_v49  ;;  %v1943_v60 = vadd.f32 %v1922_v8, %v3086_v11  ;;  %v1691_v11 = vld [vmem:[%s3576_s0 + $0x410] sm:$0xff] }
 0x4f9   :  { %v1921_v48 = vadd.f32 %v1879_v4, %v3149_v29  ;;  %v1619_v3 = vpop.permute.xlu1 %1618 }
 0x4fa   :  { %v1642_v29 = vmul.f32 %v1619_v3, %v1607_v34  ;;  %v2054_v3 = vld [vmem:[%s3576_s0 + $0x158] sm:$0xff] }
 0x4fb   :  { %v1942_v22 = vadd.f32 %v1921_v48, %v3047_v24  ;;  %v1565_v24 = vld [vmem:[%s3576_s0 + $0x368] sm:$0xff]  ;;  %v2055_v48 = vld [vmem:[%s3576_s0 + $0x160] sm:$0xff]  ;;  %v2050_v34 = vld [vmem:[%s3576_s0 + $0x138] sm:$0xff] }
 0x4fc   :  { %v1600_v13 = vmul.f32 %v1577_v2, %v1565_v24  ;;  %v1894_v52 = vadd.f32 %v1684_v37, %v1642_v29  ;;  %v2052_v2 = vld [vmem:[%s3576_s0 + $0x148] sm:$0xff]  ;;  %v2316_v24 = vld [vmem:[%s3576_s0 + $0xd7] ss:$0 sm:$0xff] }
 0x4fd   :  { %v1573_v6 = vpop.permute.xlu2 %1572 }
 0x4fe   :  { %v1887_v38 = vadd.f32 %v1600_v13, %v1558_v36  ;;  %v1599_v40 = vmul.f32 %v1573_v6, %v1564_v30 }
 0x500   :  { %v1929_v25 = vadd.f32 %v1894_v52, %v1887_v38 }
 0x502   :  { %v1703_v31 = vpop.permute.xlu1 %1702 }
 0x503   :  { %v1726_v39 = vmul.f32 %v1703_v31, %v1691_v11  ;;  %v2051_v31 = vld [vmem:[%s3576_s0 + $0x140] sm:$0xff]  ;;  %v2014_v11 = vpop.f32.mrf.mxu0 }
 0x505   :  { %v1901_v14 = vadd.f32 %v1768_v23, %v1726_v39 }
 0x506   :  { %v1699_v46 = vpop.permute.xlu2 %1698 }
 0x507   :  { %v1725_v21 = vmul.f32 %v1699_v46, %v1690_v20 }
 0x50b   :  { %v1829_v59 = vpop.permute.xlu1 %1828 }
 0x50c   :  { %v1852_v32 = vmul.f32 %v1829_v59, %v1817_v42  ;;  %v2317_v42 = vld [vmem:[%s3576_s0 + $0xd8] ss:$0 sm:$0xff] }
 0x50e   :  { %v1908_v10 = vadd.f32 %v1852_v32, %v1810_v56  ;;  %v2370_v32 = vmov 0.0  }
 0x50f   :  { %v1783_v27 = vpop.permute.xlu2 %1782  ;;  %2106 = vst [vmem:[#allocation2] sm:$0xff] %v2370_v32 }
 0x510   :  { %v1936_v53 = vadd.f32 %v1908_v10, %v1901_v14  ;;  %v1809_v9 = vmul.f32 %v1783_v27, %v1774_v54 }
 0x512   :  { %v1950_v44 = vadd.f32 %v1936_v53, %v1929_v25  ;;  %v1907_v57 = vadd.f32 %v1851_v47, %v1809_v9 }
 0x514   :  { %v1531_v45 = vpop.permute.xlu1 %1530  ;;  %v1957_v33 = vadd.f32 %v1950_v44, %v1943_v60  ;;  %v1963_v60 = vld [vmem:[%s3576_s0 + $0x40] sm:$0x3] }
 0x515   :  { %v1557_v16 = vmul.f32 %v1531_v45, %v1522_v61 }
 0x516   :  { %2038 = vmatpush.msrb.mxu0 %v1957_v33 }
 0x517   :  { %v1886_v19 = vadd.f32 %v1599_v40, %v1557_v16 }
 0x51d   :  { %v1657_v1 = vpop.permute.xlu1 %1656 }
 0x51e   :  { %v1683_v63 = vmul.f32 %v1657_v1, %v1648_v5 }
 0x520   :  { %v1893_v12 = vadd.f32 %v1683_v63, %v1641_v17 }
 0x522   :  { %v1928_v49 = vadd.f32 %v1893_v12, %v1886_v19 }
 0x526   :  { %v1741_v41 = vpop.permute.xlu1 %1740 }
 0x527   :  { %v1767_v51 = vmul.f32 %v1741_v41, %v1732_v43 }
 0x529   :  { %v1900_v55 = vadd.f32 %v1767_v51, %v1725_v21 }
 0x52b   :  { %v1935_v8 = vadd.f32 %v1907_v57, %v1900_v55 }
 0x52d   :  { %v1949_v28 = vadd.f32 %v1935_v8, %v1928_v49 }
 0x52f   :  { %v1956_v4 = vadd.f32 %v1949_v28, %v1942_v22  ;;  %v2053_v22 = vld [vmem:[%s3576_s0 + $0x150] sm:$0xff]  ;;  %s2371_s0 = smov [#allocation2]  }
 0x530   :  { %s2113_s17 = sshll.u32 %s2371_s0, 4  ;;  %s2114_s17 = int_to_ptr.vmem [resolvable:$true] %s2113_s17 }
 0x531   :  { %2039 = vmatpush.msrb.mxu0 %v1956_v4 }
 0x532   :  { %2204 = vmatmul.msk.f32.vlgmr.msrb.gmra.mxu0 %vm2017_vm5, %v1963_v60 }
 0x533   :  { %2069 = vmatpush.msra.mxu0 %v2055_v48 }
 0x535   :  { %2070 = vmatpush.msra.mxu0 %v2054_v3 }
 0x537   :  { %2071 = vmatpush.msra.mxu0 %v2053_v22 }
 0x539   :  { %2072 = vmatpush.msra.mxu0 %v2052_v2 }
 0x53b   :  { %2073 = vmatpush.msra.mxu0 %v2051_v31 }
 0x53d   :  { %2074 = vmatpush.msra.mxu0 %v2050_v34 }
 0x53f   :  { %2075 = vmatpush.msra.mxu0 %v2049_v7 }
 0x541   :  { %2076 = vmatpush.msra.mxu0 %v2048_v18 }
 0x5af   :  { %v2041_v29 = vpop.f32.mrf.mxu0 }
 0x5b0   :  { %v2042_v35 = vadd.f32 %v2041_v29, %v2014_v11 }
 0x5b2   :  { %v2046_v26 = vadd.f32 %v2316_v24, %v2042_v35 }
 0x5b4   :  { %v2047_v15 = vmax.f32 %v2046_v26, 0.0 }
 0x5b6   :  { %2205 = vmatmul.msk.f32.vlgmr.msra.gmra.mxu0 %vm1993_vm4, %v2047_v15 }
 0x633   :  { %v2078_v36 = vpop.f32.mrf.mxu0 }
 0x634   :  { %v2079_v37 = vadd.f32 %v2317_v42, %v2078_v36 }
 0x636   :  { %v2082_v39 = vsel %vm2081_vm6, %v2079_v37, -inf }
 0x637   :  { %2083 = vmax.xlane.f32.xlu1 %v2082_v39 }
 0x6aa   :  { %v2084_v13 = vpop.xlane.xlu1 %2083 }
 0x6ab   :  { %v2085_v59 = vsub.f32 %v2079_v37, %v2084_v13 }
 0x6ad   :  { %v2086_v56 = vmul.f32 1.442695, %v2085_v59 }
 0x6af   :  { %2324 = vpow2.f32 %v2086_v56 }
 0x6b5   :  { %v2325_v23 = vpop.eup %2324 }
 0x6b6   :  { %v2088_v52 = vsel %vm2081_vm6, %v2325_v23, 0.0 }
 0x6b7   :  { %2089 = vadd.xlane.f32.xlu2 %v2088_v52 }
 0x72a   :  { %v2090_v38 = vpop.xlane.xlu2 %2089 }
 0x72b   :  { %2326 = vrcp.f32 %v2090_v38  ;;  %v2102_v25 = vand.u32 2147483648, %v2090_v38  ;;  %v2100_v44 = vand.u32 2147483647, %v2090_v38  ;;  %vm2096_vm8 = vweird.f32 %v2090_v38 }
 0x72d   :  { %v2103_v33 = vor.u32 1.1754944e-38, %v2102_v25  ;;  %vm2101_vm10 = vcmp.eq.f32.partialorder %v2100_v44, 8.507059e+37 }
 0x731   :  { %v2327_v6 = vpop.eup %2326 }
 0x732   :  { %v2092_v14 = vmul.f32 %v2327_v6, %v2090_v38  ;;  %vm2097_vm7 = vweird.f32 %v2327_v6 }
 0x733   :  { %vm2098_vm9 = vmor %vm2096_vm8, %vm2097_vm7 }
 0x734   :  { %v2093_v10 = vsub.f32 1.0, %v2092_v14 }
 0x736   :  { %v2094_v53 = vmul.f32 %v2327_v6, %v2093_v10 }
 0x738   :  { %v2095_v45 = vadd.f32 %v2327_v6, %v2094_v53 }
 0x73a   :  { %v2099_v46 = vsel %vm2098_vm9, %v2327_v6, %v2095_v45 }
 0x73b   :  { %v2104_v58 = vsel %vm2101_vm10, %v2103_v33, %v2099_v46 }
 0x73c   :  { %v2105_v1 = vmul.f32 %v2325_v23, %v2104_v58 }
 0x73e   :  { %2107 = vst.msk [vmem:[#allocation2] sm:$0x3] %vm2081_vm6, %v2105_v1 }
 0x73f   :  { %2118 = dma.vmem_to_hbm [thread:$0]  %s2114_s17, 128, %s2116_s20, [#allocation3]  }
 0x740   :  { %2352 = dma.done.wait [#allocation3], 128  }
 0x741   :  { %2353 = vsyncadd [#allocation3], 4294967168 }
 0x742   :  { %2123 = vsyncpa [#allocation3], 1 }

</bundles_post_ra>
